<compile_context>
chip_gen: v5e
topology: v5e:2x2
jax: 0.10.0
libtpu: 0.0.40
codegen_flags: <defaults>
</compile_context>

<pallas_src>
import functools

import jax
import jax.numpy as jnp
from jax import lax
from jax.experimental import pallas as pl
from jax.experimental.pallas import tpu as pltpu


def _round_up(v, m):
    return ((v + m - 1) // m) * m


def _vmem_limit_bytes():
    # Generation-aware scoped-VMEM budget: v5e/v6e have 128 MiB physical VMEM (use up
    # to 96 MiB); v7x only has 64 MiB (stay <= 48 MiB).
    try:
        cap = pltpu.get_tpu_info().vmem_capacity_bytes
    except Exception:  # pragma: no cover - conservative fallback
        return 64 * 1024 * 1024
    if cap >= 128 * 1024 * 1024:
        return 96 * 1024 * 1024
    return 48 * 1024 * 1024


_VMEM_LIMIT = _vmem_limit_bytes()


def _choose_strip_rows(ho, wo, cmid, budget_vregs=32):
    """Output rows per strip: divisor of Ho keeping the f32 strip accumulator
    [So, Wo, Cmid] under ~budget_vregs vregs, preferring >= 2 strips (pipelining /
    megacore) when possible."""
    per_row = max(1, -(-wo // 8)) * max(1, -(-cmid // 128))
    cap = max(1, min(ho, budget_vregs // per_row))
    for d in range(cap, 1, -1):
        if ho % d == 0 and ho // d >= 2:
            return d
    for d in range(cap, 0, -1):
        if ho % d == 0:
            return d
    return 1


# -----------------------------------------------------------------------------
# Fused branch kernel:
#   [optional 1x1 conv + BN + ReLU] -> depthwise kxk conv + BN -> 1x1 conv + BN + ReLU
# gridded over (batch, output-row strips).  Channels-last layout (C on lanes).
# -----------------------------------------------------------------------------
def _branch_kernel(*refs, ksize, stride, pad, H, W, with_pw1):
    if with_pw1:
        (x_ref, w1_ref, b1_ref, dww_ref, dwb_ref, w2_ref, b2_ref,
         o_ref, mid_ref) = refs
    else:
        (x_ref, dww_ref, dwb_ref, w2_ref, b2_ref, o_ref, mid_ref) = refs

    So, Wo, Cout = o_ref.shape
    Hs, Wp, Cm = mid_ref.shape
    r0 = pl.program_id(1) * (So * stride)      # first padded-input row of this strip

    if with_pw1:
        # Stage 1: 1x1 conv + BN + ReLU over the strip(+halo) rows.  It is computed
        # from the spatially zero-padded input and then masked back to zero on the pad
        # ring, because in the reference the zero padding applies AFTER conv1+BN+ReLU.
        xs = x_ref[pl.ds(r0, Hs), :, :]                       # [Hs, Wp, Cin] bf16
        Cin = xs.shape[-1]
        mid = jnp.dot(xs.reshape(Hs * Wp, Cin), w1_ref[...],
                      preferred_element_type=jnp.float32)
        mid = jnp.maximum(mid + b1_ref[...], 0.0).reshape(Hs, Wp, Cm)
        row = r0 + lax.broadcasted_iota(jnp.int32, (Hs, Wp, Cm), 0)
        col = lax.broadcasted_iota(jnp.int32, (Hs, Wp, Cm), 1)
        inside = (row >= pad) & (row < pad + H) & (col >= pad) & (col < pad + W)
        mid_ref[...] = jnp.where(inside, mid, 0.0)
    else:
        # branch_proj: the depthwise conv consumes the (already zero-padded) input.
        mid_ref[...] = x_ref[pl.ds(r0, Hs), :, :].astype(jnp.float32)

    # Stage 2: depthwise kxk conv + BN shift.  Per-strip f32 accumulator held in vregs
    # (single store path, no output-ref read-modify-write, no spills).
    acc = jnp.zeros((So, Wo, Cm), jnp.float32)
    for ky in range(ksize):
        for kx in range(ksize):
            if stride == 1:
                tap = mid_ref[pl.ds(ky, So), pl.ds(kx, Wo), :]
            else:
                tap = mid_ref[pl.ds(ky, So, stride=stride),
                              pl.ds(kx, Wo, stride=stride), :]
            acc = acc + tap * dww_ref[ky * ksize + kx]
    acc = acc + dwb_ref[...]

    # Stage 3: 1x1 conv + BN + ReLU -- one matmul + one store per strip.
    y = jnp.dot(acc.reshape(So * Wo, Cm).astype(jnp.bfloat16), w2_ref[...],
                preferred_element_type=jnp.float32)
    y = jnp.maximum(y + b2_ref[...], 0.0)
    o_ref[...] = y.reshape(So, Wo, Cout).astype(o_ref.dtype)


def fused_branch(xp, weights, *, ksize, stride, H, W, out_dtype=jnp.float32):
    """Fused [optional 1x1+BN+ReLU] -> dw kxk+BN -> 1x1+BN+ReLU.

    xp:      [N, Hp, Wp, Cin] zero-padded NHWC bf16 input (Hp = H+2*pad, Wp >= W+2*pad,
             Wp a multiple of 16 so in-kernel reshapes are layout no-ops).
    weights: (w1, b1, dww, dwb, w2, b2); w1/b1 may be None (branch_proj).
    Returns  [N, Ho, Wo, Cout] float32 (NHWC).
    """
    w1, b1, dww, dwb, w2, b2 = weights
    with_pw1 = w1 is not None
    N, Hp, Wp, Cin = xp.shape
    pad = ksize // 2
    assert Hp == H + 2 * pad and Wp >= W + 2 * pad and Wp % 16 == 0
    Ho = (H + 2 * pad - ksize) // stride + 1
    Wo = (W + 2 * pad - ksize) // stride + 1
    Cm = dww.shape[-1]
    Cout = w2.shape[-1]

    So = _choose_strip_rows(Ho, Wo, Cm)
    num_strips = Ho // So
    Hs = (So - 1) * stride + ksize            # mid rows per output strip (incl. halo)

    kern = functools.partial(_branch_kernel, ksize=ksize, stride=stride, pad=pad,
                             H=H, W=W, with_pw1=with_pw1)

    in_specs = [pl.BlockSpec((None, Hp, Wp, Cin), lambda n, j: (n, 0, 0, 0))]
    args = [xp]
    if with_pw1:
        in_specs += [pl.BlockSpec((Cin, Cm), lambda n, j: (0, 0)),
                     pl.BlockSpec((1, Cm), lambda n, j: (0, 0))]
        args += [w1, b1]
    in_specs += [pl.BlockSpec((ksize * ksize, 1, Cm), lambda n, j: (0, 0, 0)),
                 pl.BlockSpec((1, 1, Cm), lambda n, j: (0, 0, 0)),
                 pl.BlockSpec((Cm, Cout), lambda n, j: (0, 0)),
                 pl.BlockSpec((1, Cout), lambda n, j: (0, 0))]
    args += [dww, dwb, w2, b2]

    flops = 2 * N * Ho * Wo * Cm * (ksize * ksize + Cout)
    if with_pw1:
        flops += 2 * N * Hp * Wp * Cin * Cm
    bytes_accessed = (N * Hp * Wp * Cin * 2 + N * Ho * Wo * Cout * 4
                      + ksize * ksize * Cm * 4 + Cm * Cout * 2
                      + (Cin * Cm * 2 if with_pw1 else 0))

    return pl.pallas_call(
        kern,
        out_shape=jax.ShapeDtypeStruct((N, Ho, Wo, Cout), out_dtype),
        grid_spec=pltpu.PrefetchScalarGridSpec(
            num_scalar_prefetch=0,
            grid=(N, num_strips),
            in_specs=in_specs,
            out_specs=pl.BlockSpec((None, So, Wo, Cout), lambda n, j: (n, j, 0, 0)),
            scratch_shapes=[pltpu.VMEM((Hs, Wp, Cm), jnp.float32)],
        ),
        compiler_params=pltpu.CompilerParams(
            dimension_semantics=("parallel", "parallel"),
            vmem_limit_bytes=_VMEM_LIMIT,
        ),
        cost_estimate=pl.CostEstimate(flops=flops, transcendentals=0,
                                      bytes_accessed=bytes_accessed),
    )(*args)


# -----------------------------------------------------------------------------
# Parameters / module
# -----------------------------------------------------------------------------
def _make_bn(key, c, eps=1e-5):
    k1, k2, k3, k4 = jax.random.split(key, 4)
    gamma = 1.0 + 0.1 * jax.random.normal(k1, (c,), jnp.float32)
    beta = 0.1 * jax.random.normal(k2, (c,), jnp.float32)
    mean = 0.1 * jax.random.normal(k3, (c,), jnp.float32)
    var = 1.0 + 0.2 * jax.random.uniform(k4, (c,), jnp.float32)
    scale = gamma * lax.rsqrt(var + eps)
    shift = beta - mean * scale
    return scale, shift


class ShufflenetPallas:
    """Pallas/TPU port of OneShot/blocks.py::Shufflenet (inference-mode BN)."""

    def __init__(self, inp, oup, mid_channels, *, ksize, stride, key):
        assert stride in (1, 2)
        assert ksize in (3, 5, 7)
        self.inp, self.oup, self.mid = inp, oup, mid_channels
        self.ksize, self.stride, self.pad = ksize, stride, ksize // 2
        outputs = oup - inp
        self.outputs = outputs

        keys = jax.random.split(key, 10)
        w_init = lambda k, shape: 0.2 * jax.random.normal(k, shape, jnp.float32)

        # branch_main: 1x1 -> BN -> ReLU -> dw kxk -> BN -> 1x1 -> BN -> ReLU
        self.pw1_w = w_init(keys[0], (inp, mid_channels))
        self.bn1 = _make_bn(keys[1], mid_channels)
        self.dw_w = w_init(keys[2], (ksize, ksize, mid_channels))
        self.bn2 = _make_bn(keys[3], mid_channels)
        self.pw2_w = w_init(keys[4], (mid_channels, outputs))
        self.bn3 = _make_bn(keys[5], outputs)
        if stride == 2:
            # branch_proj: dw kxk -> BN -> 1x1 -> BN -> ReLU
            self.dwp_w = w_init(keys[6], (ksize, ksize, inp))
            self.bnp1 = _make_bn(keys[7], inp)
            self.pwp_w = w_init(keys[8], (inp, inp))
            self.bnp2 = _make_bn(keys[9], inp)

        # Fold BN scale/shift (and, for stride=1, the channel_shuffle odd-channel
        # selection) into the conv weights once, at module build time.
        def fold_pw(w, bn):
            s, b = bn
            return ((w * s[None, :]).astype(jnp.bfloat16),
                    b.reshape(1, -1).astype(jnp.float32))

        def fold_dw(w, bn):
            s, b = bn
            k, c = w.shape[0], w.shape[-1]
            wf = (w * s[None, None, :]).reshape(k * k, 1, c).astype(jnp.float32)
            return wf, b.reshape(1, 1, c).astype(jnp.float32)

        if stride == 1:
            # Zeroing the even rows of the first 1x1 weight implements the
            # channel_shuffle selection `x = old_x[:, 1::2]` with no activation gather.
            w1_full = jnp.zeros((2 * inp, mid_channels),
                                jnp.float32).at[1::2, :].set(self.pw1_w)
        else:
            w1_full = self.pw1_w
        self.w1f, self.b1f = fold_pw(w1_full, self.bn1)
        self.dwwf, self.dwbf = fold_dw(self.dw_w, self.bn2)
        self.w2f, self.b2f = fold_pw(self.pw2_w, self.bn3)
        if stride == 2:
            self.dwpf, self.dbpf = fold_dw(self.dwp_w, self.bnp1)
            self.wpf, self.bpf = fold_pw(self.pwp_w, self.bnp2)

    def _prep_input(self, old_x):
        # One fused XLA pass: NCHW -> NHWC transpose + bf16 cast + spatial zero-pad
        # (width padded up to a multiple of 16 so in-kernel reshapes are layout no-ops).
        pad = self.pad
        _, _, H, W = old_x.shape
        wp = _round_up(W + 2 * pad, 16)
        x = jnp.transpose(old_x, (0, 2, 3, 1)).astype(jnp.bfloat16)
        return jnp.pad(x, ((0, 0), (pad, pad), (pad, wp - W - pad), (0, 0)))

    def __call__(self, old_x):
        N, C, H, W = old_x.shape
        if self.stride == 1:
            assert C % 4 == 0 and C == 2 * self.inp
        else:
            assert C == self.inp
        xp = self._prep_input(old_x)

        main = fused_branch(xp, (self.w1f, self.b1f, self.dwwf, self.dwbf,
                                 self.w2f, self.b2f),
                            ksize=self.ksize, stride=self.stride, H=H, W=W)
        main = jnp.transpose(main, (0, 3, 1, 2))                 # NHWC -> NCHW

        if self.stride == 1:
            x_proj = old_x[:, 0::2]                              # channel_shuffle even half
            return jnp.concatenate([x_proj, main], axis=1)
        proj = fused_branch(xp, (None, None, self.dwpf, self.dbpf,
                                 self.wpf, self.bpf),
                            ksize=self.ksize, stride=self.stride, H=H, W=W)
        proj = jnp.transpose(proj, (0, 3, 1, 2))
        return jnp.concatenate([proj, main], axis=1)


# -----------------------------------------------------------------------------
# Pure-JAX reference (lax conv, f32), used only to validate the Pallas path
# -----------------------------------------------------------------------------
def _ref_conv1x1(x, w):
    kern = jnp.transpose(w, (1, 0))[:, :, None, None]            # [Cout, Cin, 1, 1]
    return lax.conv_general_dilated(x, kern, (1, 1), ((0, 0), (0, 0)),
                                    dimension_numbers=('NCHW', 'OIHW', 'NCHW'),
                                    precision=lax.Precision.HIGHEST)


def _ref_dwconv(x, w, stride, pad):
    C = x.shape[1]
    kern = jnp.transpose(w, (2, 0, 1))[:, None, :, :]            # [C, 1, k, k]
    return lax.conv_general_dilated(x, kern, (stride, stride),
                                    ((pad, pad), (pad, pad)),
                                    dimension_numbers=('NCHW', 'OIHW', 'NCHW'),
                                    feature_group_count=C,
                                    precision=lax.Precision.HIGHEST)


def _ref_channel_shuffle(x):
    b, c, h, w = x.shape
    x = x.reshape(b * c // 2, 2, h * w)
    x = jnp.transpose(x, (1, 0, 2))
    x = x.reshape(2, -1, c // 2, h, w)
    return x[0], x[1]


def reference_forward(m, old_x):
    def bn(x, sb):
        s, b = sb
        return x * s[None, :, None, None] + b[None, :, None, None]

    def branch_main(x):
        x = jnp.maximum(bn(_ref_conv1x1(x, m.pw1_w), m.bn1), 0.0)
        x = bn(_ref_dwconv(x, m.dw_w, m.stride, m.pad), m.bn2)
        x = jnp.maximum(bn(_ref_conv1x1(x, m.pw2_w), m.bn3), 0.0)
        return x

    def branch_proj(x):
        x = bn(_ref_dwconv(x, m.dwp_w, m.stride, m.pad), m.bnp1)
        x = jnp.maximum(bn(_ref_conv1x1(x, m.pwp_w), m.bnp2), 0.0)
        return x

    if m.stride == 1:
        x_proj, x = _ref_channel_shuffle(old_x)
        return jnp.concatenate([x_proj, branch_main(x)], axis=1)
    return jnp.concatenate([branch_proj(old_x), branch_main(old_x)], axis=1)


# -----------------------------------------------------------------------------
if __name__ == "__main__":
    key = jax.random.PRNGKey(0)
    k1, k2, k3, k4 = jax.random.split(key, 4)

    # stride=1 block: inp=8, oup=16, mid=16, ksize=3; block input channels = 2*inp = 16
    m1 = ShufflenetPallas(8, 16, 16, ksize=3, stride=1, key=k1)
    x1 = jax.random.normal(k2, (2, 16, 16, 16), jnp.float32)
    y1 = jax.block_until_ready(m1(x1))
    r1 = jax.block_until_ready(reference_forward(m1, x1))
    assert y1.shape == (2, 16, 16, 16), y1.shape
    assert bool(jnp.allclose(y1, r1, atol=5e-2, rtol=5e-2)), \
        float(jnp.max(jnp.abs(y1 - r1)))

    # stride=2 block: inp=8, oup=24, mid=16, ksize=5; spatial 16 -> 8
    m2 = ShufflenetPallas(8, 24, 16, ksize=5, stride=2, key=k3)
    x2 = jax.random.normal(k4, (2, 8, 16, 16), jnp.float32)
    y2 = jax.block_until_ready(m2(x2))
    r2 = jax.block_until_ready(reference_forward(m2, x2))
    assert y2.shape == (2, 24, 8, 8), y2.shape
    assert bool(jnp.allclose(y2, r2, atol=5e-2, rtol=5e-2)), \
        float(jnp.max(jnp.abs(y2 - r2)))

    print("KERNEL_OK")
</pallas_src>

<mosaic_0001>
module attributes {stable_mosaic.version = 11 : i64} {
  func.func @_branch_kernel(%arg0: i32, %arg1: i32, %arg2: memref<1x18x32x16xbf16, #tpu.memory_space<vmem>>, %arg3: memref<16x16xbf16, #tpu.memory_space<vmem>>, %arg4: memref<1x16xf32, #tpu.memory_space<vmem>>, %arg5: memref<9x1x16xf32, #tpu.memory_space<vmem>>, %arg6: memref<1x1x16xf32, #tpu.memory_space<vmem>>, %arg7: memref<16x8xbf16, #tpu.memory_space<vmem>>, %arg8: memref<1x8xf32, #tpu.memory_space<vmem>>, %arg9: memref<1x8x16x8xf32, #tpu.memory_space<vmem>>, %arg10: memref<10x32x16xf32, #tpu.memory_space<vmem>>) attributes {dimension_semantics = [#tpu.dimension_semantics<parallel>, #tpu.dimension_semantics<parallel>], iteration_bounds = array<i64: 2, 2>, scalar_prefetch = 0 : i64, scratch_operands = 1 : i64, tpu.core_type = #tpu.core_type<tc>, window_params = [{transform_indices = @transform_0, window_bounds = array<i64: 1, 18, 32, 16>}, {pipeline_mode = #tpu.pipeline_mode<synchronous>, transform_indices = @transform_1, window_bounds = array<i64: 16, 16>}, {pipeline_mode = #tpu.pipeline_mode<synchronous>, transform_indices = @transform_2, window_bounds = array<i64: 1, 16>}, {pipeline_mode = #tpu.pipeline_mode<synchronous>, transform_indices = @transform_3, window_bounds = array<i64: 9, 1, 16>}, {pipeline_mode = #tpu.pipeline_mode<synchronous>, transform_indices = @transform_4, window_bounds = array<i64: 1, 1, 16>}, {pipeline_mode = #tpu.pipeline_mode<synchronous>, transform_indices = @transform_5, window_bounds = array<i64: 16, 8>}, {pipeline_mode = #tpu.pipeline_mode<synchronous>, transform_indices = @transform_6, window_bounds = array<i64: 1, 8>}, {transform_indices = @transform_7, window_bounds = array<i64: 1, 8, 16, 8>}]} {
    %c8_i32 = arith.constant 8 : i32
    %0 = arith.muli %arg1, %c8_i32 : i32
    %c0 = arith.constant 0 : index
    %1 = arith.index_cast %0 : i32 to index
    %c0_0 = arith.constant 0 : index
    %c0_1 = arith.constant 0 : index
    %2 = vector.load %arg2[%c0, %1, %c0_0, %c0_1] : memref<1x18x32x16xbf16, #tpu.memory_space<vmem>>, vector<1x10x32x16xbf16>
    %3 = vector.shape_cast %2 : vector<1x10x32x16xbf16> to vector<10x32x16xbf16>
    %4 = vector.shape_cast %3 : vector<10x32x16xbf16> to vector<320x16xbf16>
    %c0_2 = arith.constant 0 : index
    %c0_3 = arith.constant 0 : index
    %5 = vector.load %arg3[%c0_2, %c0_3] : memref<16x16xbf16, #tpu.memory_space<vmem>>, vector<16x16xbf16>
    %cst = arith.constant dense<0.000000e+00> : vector<320x16xf32>
    %6 = tpu.matmul %4, %5, %cst {dimension_numbers = #tpu.dot_dimension_numbers<[1], [0], [0], [1], [0, 0, 1, 1], [], []>} : vector<320x16xbf16>, vector<16x16xbf16>, vector<320x16xf32> -> vector<320x16xf32>
    %c0_4 = arith.constant 0 : index
    %c0_5 = arith.constant 0 : index
    %7 = vector.load %arg4[%c0_4, %c0_5] : memref<1x16xf32, #tpu.memory_space<vmem>>, vector<1x16xf32>
    %8 = vector.broadcast %7 : vector<1x16xf32> to vector<320x16xf32>
    %9 = arith.addf %6, %8 : vector<320x16xf32>
    %cst_6 = arith.constant 0.000000e+00 : f32
    %10 = vector.broadcast %cst_6 : f32 to vector<320x16xf32>
    %11 = arith.maximumf %9, %10 : vector<320x16xf32>
    %12 = vector.shape_cast %11 : vector<320x16xf32> to vector<10x32x16xf32>
    %13 = tpu.iota {dimensions = array<i32: 0>} : vector<10x32x16xi32>
    %14 = vector.broadcast %0 : i32 to vector<10x32x16xi32>
    %15 = arith.addi %14, %13 : vector<10x32x16xi32>
    %16 = tpu.iota {dimensions = array<i32: 1>} : vector<10x32x16xi32>
    %c1_i32 = arith.constant 1 : i32
    %17 = vector.broadcast %c1_i32 : i32 to vector<10x32x16xi32>
    %18 = arith.cmpi sge, %15, %17 : vector<10x32x16xi32>
    %c17_i32 = arith.constant 17 : i32
    %19 = vector.broadcast %c17_i32 : i32 to vector<10x32x16xi32>
    %20 = arith.cmpi slt, %15, %19 : vector<10x32x16xi32>
    %21 = arith.andi %18, %20 : vector<10x32x16xi1>
    %c1_i32_7 = arith.constant 1 : i32
    %22 = vector.broadcast %c1_i32_7 : i32 to vector<10x32x16xi32>
    %23 = arith.cmpi sge, %16, %22 : vector<10x32x16xi32>
    %24 = arith.andi %21, %23 : vector<10x32x16xi1>
    %c17_i32_8 = arith.constant 17 : i32
    %25 = vector.broadcast %c17_i32_8 : i32 to vector<10x32x16xi32>
    %26 = arith.cmpi slt, %16, %25 : vector<10x32x16xi32>
    %27 = arith.andi %24, %26 : vector<10x32x16xi1>
    %cst_9 = arith.constant 0.000000e+00 : f32
    %28 = vector.broadcast %cst_9 : f32 to vector<10x32x16xf32>
    %29 = arith.select %27, %12, %28 : vector<10x32x16xi1>, vector<10x32x16xf32>
    %c0_10 = arith.constant 0 : index
    %c0_11 = arith.constant 0 : index
    %c0_12 = arith.constant 0 : index
    %30 = vector.load %arg10[%c0_10, %c0_11, %c0_12] : memref<10x32x16xf32, #tpu.memory_space<vmem>>, vector<10x32x16xf32>
    tpu.vector_store %arg10[%c0_10, %c0_11, %c0_12], %29 {strides = array<i32>} : memref<10x32x16xf32, #tpu.memory_space<vmem>>, vector<10x32x16xf32>,
    %cst_13 = arith.constant 0.000000e+00 : f32
    %31 = vector.broadcast %cst_13 : f32 to vector<8x16x16xf32>
    %c0_14 = arith.constant 0 : index
    %c0_15 = arith.constant 0 : index
    %c0_16 = arith.constant 0 : index
    %32 = vector.load %arg10[%c0_14, %c0_15, %c0_16] : memref<10x32x16xf32, #tpu.memory_space<vmem>>, vector<8x16x16xf32>
    %c0_17 = arith.constant 0 : index
    %c0_18 = arith.constant 0 : index
    %c0_19 = arith.constant 0 : index
    %33 = vector.load %arg5[%c0_17, %c0_18, %c0_19] : memref<9x1x16xf32, #tpu.memory_space<vmem>>, vector<1x1x16xf32>
    %34 = vector.shape_cast %33 : vector<1x1x16xf32> to vector<1x16xf32>
    %35 = vector.shape_cast %34 : vector<1x16xf32> to vector<1x1x16xf32>
    %36 = vector.broadcast %35 : vector<1x1x16xf32> to vector<8x16x16xf32>
    %37 = arith.mulf %32, %36 : vector<8x16x16xf32>
    %38 = arith.addf %31, %37 : vector<8x16x16xf32>
    %c0_20 = arith.constant 0 : index
    %c1 = arith.constant 1 : index
    %c0_21 = arith.constant 0 : index
    %39 = vector.load %arg10[%c0_20, %c1, %c0_21] : memref<10x32x16xf32, #tpu.memory_space<vmem>>, vector<8x16x16xf32>
    %c1_22 = arith.constant 1 : index
    %c0_23 = arith.constant 0 : index
    %c0_24 = arith.constant 0 : index
    %40 = vector.load %arg5[%c1_22, %c0_23, %c0_24] : memref<9x1x16xf32, #tpu.memory_space<vmem>>, vector<1x1x16xf32>
    %41 = vector.shape_cast %40 : vector<1x1x16xf32> to vector<1x16xf32>
    %42 = vector.shape_cast %41 : vector<1x16xf32> to vector<1x1x16xf32>
    %43 = vector.broadcast %42 : vector<1x1x16xf32> to vector<8x16x16xf32>
    %44 = arith.mulf %39, %43 : vector<8x16x16xf32>
    %45 = arith.addf %38, %44 : vector<8x16x16xf32>
    %c0_25 = arith.constant 0 : index
    %c2 = arith.constant 2 : index
    %c0_26 = arith.constant 0 : index
    %46 = vector.load %arg10[%c0_25, %c2, %c0_26] : memref<10x32x16xf32, #tpu.memory_space<vmem>>, vector<8x16x16xf32>
    %c2_27 = arith.constant 2 : index
    %c0_28 = arith.constant 0 : index
    %c0_29 = arith.constant 0 : index
    %47 = vector.load %arg5[%c2_27, %c0_28, %c0_29] : memref<9x1x16xf32, #tpu.memory_space<vmem>>, vector<1x1x16xf32>
    %48 = vector.shape_cast %47 : vector<1x1x16xf32> to vector<1x16xf32>
    %49 = vector.shape_cast %48 : vector<1x16xf32> to vector<1x1x16xf32>
    %50 = vector.broadcast %49 : vector<1x1x16xf32> to vector<8x16x16xf32>
    %51 = arith.mulf %46, %50 : vector<8x16x16xf32>
    %52 = arith.addf %45, %51 : vector<8x16x16xf32>
    %c1_30 = arith.constant 1 : index
    %c0_31 = arith.constant 0 : index
    %c0_32 = arith.constant 0 : index
    %53 = vector.load %arg10[%c1_30, %c0_31, %c0_32] : memref<10x32x16xf32, #tpu.memory_space<vmem>>, vector<8x16x16xf32>
    %c3 = arith.constant 3 : index
    %c0_33 = arith.constant 0 : index
    %c0_34 = arith.constant 0 : index
    %54 = vector.load %arg5[%c3, %c0_33, %c0_34] : memref<9x1x16xf32, #tpu.memory_space<vmem>>, vector<1x1x16xf32>
    %55 = vector.shape_cast %54 : vector<1x1x16xf32> to vector<1x16xf32>
    %56 = vector.shape_cast %55 : vector<1x16xf32> to vector<1x1x16xf32>
    %57 = vector.broadcast %56 : vector<1x1x16xf32> to vector<8x16x16xf32>
    %58 = arith.mulf %53, %57 : vector<8x16x16xf32>
    %59 = arith.addf %52, %58 : vector<8x16x16xf32>
    %c1_35 = arith.constant 1 : index
    %c1_36 = arith.constant 1 : index
    %c0_37 = arith.constant 0 : index
    %60 = vector.load %arg10[%c1_35, %c1_36, %c0_37] : memref<10x32x16xf32, #tpu.memory_space<vmem>>, vector<8x16x16xf32>
    %c4 = arith.constant 4 : index
    %c0_38 = arith.constant 0 : index
    %c0_39 = arith.constant 0 : index
    %61 = vector.load %arg5[%c4, %c0_38, %c0_39] : memref<9x1x16xf32, #tpu.memory_space<vmem>>, vector<1x1x16xf32>
    %62 = vector.shape_cast %61 : vector<1x1x16xf32> to vector<1x16xf32>
    %63 = vector.shape_cast %62 : vector<1x16xf32> to vector<1x1x16xf32>
    %64 = vector.broadcast %63 : vector<1x1x16xf32> to vector<8x16x16xf32>
    %65 = arith.mulf %60, %64 : vector<8x16x16xf32>
    %66 = arith.addf %59, %65 : vector<8x16x16xf32>
    %c1_40 = arith.constant 1 : index
    %c2_41 = arith.constant 2 : index
    %c0_42 = arith.constant 0 : index
    %67 = vector.load %arg10[%c1_40, %c2_41, %c0_42] : memref<10x32x16xf32, #tpu.memory_space<vmem>>, vector<8x16x16xf32>
    %c5 = arith.constant 5 : index
    %c0_43 = arith.constant 0 : index
    %c0_44 = arith.constant 0 : index
    %68 = vector.load %arg5[%c5, %c0_43, %c0_44] : memref<9x1x16xf32, #tpu.memory_space<vmem>>, vector<1x1x16xf32>
    %69 = vector.shape_cast %68 : vector<1x1x16xf32> to vector<1x16xf32>
    %70 = vector.shape_cast %69 : vector<1x16xf32> to vector<1x1x16xf32>
    %71 = vector.broadcast %70 : vector<1x1x16xf32> to vector<8x16x16xf32>
    %72 = arith.mulf %67, %71 : vector<8x16x16xf32>
    %73 = arith.addf %66, %72 : vector<8x16x16xf32>
    %c2_45 = arith.constant 2 : index
    %c0_46 = arith.constant 0 : index
    %c0_47 = arith.constant 0 : index
    %74 = vector.load %arg10[%c2_45, %c0_46, %c0_47] : memref<10x32x16xf32, #tpu.memory_space<vmem>>, vector<8x16x16xf32>
    %c6 = arith.constant 6 : index
    %c0_48 = arith.constant 0 : index
    %c0_49 = arith.constant 0 : index
    %75 = vector.load %arg5[%c6, %c0_48, %c0_49] : memref<9x1x16xf32, #tpu.memory_space<vmem>>, vector<1x1x16xf32>
    %76 = vector.shape_cast %75 : vector<1x1x16xf32> to vector<1x16xf32>
    %77 = vector.shape_cast %76 : vector<1x16xf32> to vector<1x1x16xf32>
    %78 = vector.broadcast %77 : vector<1x1x16xf32> to vector<8x16x16xf32>
    %79 = arith.mulf %74, %78 : vector<8x16x16xf32>
    %80 = arith.addf %73, %79 : vector<8x16x16xf32>
    %c2_50 = arith.constant 2 : index
    %c1_51 = arith.constant 1 : index
    %c0_52 = arith.constant 0 : index
    %81 = vector.load %arg10[%c2_50, %c1_51, %c0_52] : memref<10x32x16xf32, #tpu.memory_space<vmem>>, vector<8x16x16xf32>
    %c7 = arith.constant 7 : index
    %c0_53 = arith.constant 0 : index
    %c0_54 = arith.constant 0 : index
    %82 = vector.load %arg5[%c7, %c0_53, %c0_54] : memref<9x1x16xf32, #tpu.memory_space<vmem>>, vector<1x1x16xf32>
    %83 = vector.shape_cast %82 : vector<1x1x16xf32> to vector<1x16xf32>
    %84 = vector.shape_cast %83 : vector<1x16xf32> to vector<1x1x16xf32>
    %85 = vector.broadcast %84 : vector<1x1x16xf32> to vector<8x16x16xf32>
    %86 = arith.mulf %81, %85 : vector<8x16x16xf32>
    %87 = arith.addf %80, %86 : vector<8x16x16xf32>
    %c2_55 = arith.constant 2 : index
    %c2_56 = arith.constant 2 : index
    %c0_57 = arith.constant 0 : index
    %88 = vector.load %arg10[%c2_55, %c2_56, %c0_57] : memref<10x32x16xf32, #tpu.memory_space<vmem>>, vector<8x16x16xf32>
    %c8 = arith.constant 8 : index
    %c0_58 = arith.constant 0 : index
    %c0_59 = arith.constant 0 : index
    %89 = vector.load %arg5[%c8, %c0_58, %c0_59] : memref<9x1x16xf32, #tpu.memory_space<vmem>>, vector<1x1x16xf32>
    %90 = vector.shape_cast %89 : vector<1x1x16xf32> to vector<1x16xf32>
    %91 = vector.shape_cast %90 : vector<1x16xf32> to vector<1x1x16xf32>
    %92 = vector.broadcast %91 : vector<1x1x16xf32> to vector<8x16x16xf32>
    %93 = arith.mulf %88, %92 : vector<8x16x16xf32>
    %94 = arith.addf %87, %93 : vector<8x16x16xf32>
    %c0_60 = arith.constant 0 : index
    %c0_61 = arith.constant 0 : index
    %c0_62 = arith.constant 0 : index
    %95 = vector.load %arg6[%c0_60, %c0_61, %c0_62] : memref<1x1x16xf32, #tpu.memory_space<vmem>>, vector<1x1x16xf32>
    %96 = vector.broadcast %95 : vector<1x1x16xf32> to vector<8x16x16xf32>
    %97 = arith.addf %94, %96 : vector<8x16x16xf32>
    %98 = vector.shape_cast %97 : vector<8x16x16xf32> to vector<128x16xf32>
    %99 = arith.truncf %98 : vector<128x16xf32> to vector<128x16xbf16>
    %c0_63 = arith.constant 0 : index
    %c0_64 = arith.constant 0 : index
    %100 = vector.load %arg7[%c0_63, %c0_64] : memref<16x8xbf16, #tpu.memory_space<vmem>>, vector<16x8xbf16>
    %cst_65 = arith.constant dense<0.000000e+00> : vector<128x8xf32>
    %101 = tpu.matmul %99, %100, %cst_65 {dimension_numbers = #tpu.dot_dimension_numbers<[1], [0], [0], [1], [0, 0, 1, 1], [], []>} : vector<128x16xbf16>, vector<16x8xbf16>, vector<128x8xf32> -> vector<128x8xf32>
    %c0_66 = arith.constant 0 : index
    %c0_67 = arith.constant 0 : index
    %102 = vector.load %arg8[%c0_66, %c0_67] : memref<1x8xf32, #tpu.memory_space<vmem>>, vector<1x8xf32>
    %103 = vector.broadcast %102 : vector<1x8xf32> to vector<128x8xf32>
    %104 = arith.addf %101, %103 : vector<128x8xf32>
    %cst_68 = arith.constant 0.000000e+00 : f32
    %105 = vector.broadcast %cst_68 : f32 to vector<128x8xf32>
    %106 = arith.maximumf %104, %105 : vector<128x8xf32>
    %107 = vector.shape_cast %106 : vector<128x8xf32> to vector<8x16x8xf32>
    %c0_69 = arith.constant 0 : index
    %c0_70 = arith.constant 0 : index
    %c0_71 = arith.constant 0 : index
    %c0_72 = arith.constant 0 : index
    %108 = vector.load %arg9[%c0_69, %c0_70, %c0_71, %c0_72] : memref<1x8x16x8xf32, #tpu.memory_space<vmem>>, vector<1x8x16x8xf32>
    %109 = vector.shape_cast %108 : vector<1x8x16x8xf32> to vector<8x16x8xf32>
    %110 = vector.shape_cast %107 : vector<8x16x8xf32> to vector<1x8x16x8xf32>
    tpu.vector_store %arg9[%c0_69, %c0_70, %c0_71, %c0_72], %110 {strides = array<i32>} : memref<1x8x16x8xf32, #tpu.memory_space<vmem>>, vector<1x8x16x8xf32>,
    return
  }
  func.func @transform_0(%arg0: i32, %arg1: i32) -> (i32, i32, i32, i32) {
    %c0_i32 = arith.constant 0 : i32
    %c0_i32_0 = arith.constant 0 : i32
    %c0_i32_1 = arith.constant 0 : i32
    %c0_i32_2 = arith.constant 0 : i32
    return %arg0, %c0_i32, %c0_i32_0, %c0_i32_1 : i32, i32, i32, i32
  }
  func.func @transform_1(%arg0: i32, %arg1: i32) -> (i32, i32) {
    %c0_i32 = arith.constant 0 : i32
    %c0_i32_0 = arith.constant 0 : i32
    %c0_i32_1 = arith.constant 0 : i32
    return %c0_i32, %c0_i32_0 : i32, i32
  }
  func.func @transform_2(%arg0: i32, %arg1: i32) -> (i32, i32) {
    %c0_i32 = arith.constant 0 : i32
    %c0_i32_0 = arith.constant 0 : i32
    %c0_i32_1 = arith.constant 0 : i32
    return %c0_i32, %c0_i32_0 : i32, i32
  }
  func.func @transform_3(%arg0: i32, %arg1: i32) -> (i32, i32, i32) {
    %c0_i32 = arith.constant 0 : i32
    %c0_i32_0 = arith.constant 0 : i32
    %c0_i32_1 = arith.constant 0 : i32
    %c0_i32_2 = arith.constant 0 : i32
    return %c0_i32, %c0_i32_0, %c0_i32_1 : i32, i32, i32
  }
  func.func @transform_4(%arg0: i32, %arg1: i32) -> (i32, i32, i32) {
    %c0_i32 = arith.constant 0 : i32
    %c0_i32_0 = arith.constant 0 : i32
    %c0_i32_1 = arith.constant 0 : i32
    %c0_i32_2 = arith.constant 0 : i32
    return %c0_i32, %c0_i32_0, %c0_i32_1 : i32, i32, i32
  }
  func.func @transform_5(%arg0: i32, %arg1: i32) -> (i32, i32) {
    %c0_i32 = arith.constant 0 : i32
    %c0_i32_0 = arith.constant 0 : i32
    %c0_i32_1 = arith.constant 0 : i32
    return %c0_i32, %c0_i32_0 : i32, i32
  }
  func.func @transform_6(%arg0: i32, %arg1: i32) -> (i32, i32) {
    %c0_i32 = arith.constant 0 : i32
    %c0_i32_0 = arith.constant 0 : i32
    %c0_i32_1 = arith.constant 0 : i32
    return %c0_i32, %c0_i32_0 : i32, i32
  }
  func.func @transform_7(%arg0: i32, %arg1: i32) -> (i32, i32, i32, i32) {
    %c0_i32 = arith.constant 0 : i32
    %c0_i32_0 = arith.constant 0 : i32
    %c0_i32_1 = arith.constant 0 : i32
    return %arg0, %arg1, %c0_i32, %c0_i32_0 : i32, i32, i32, i32
  }
}

</mosaic_0001>

<bundles_post_ra>
// kernel: tpu_custom_call.1
= control target key start
LH: loop header
LB: loop body
LE: loop exit
PB: predicated region body
PF: predicated region fallthrough
CT: control target
= control target key end

     0   :  { %s1900_s24 = smov 0   ;;  %s1902_s25 = smov 0   ;;  %s2765_s0 = inlined_call_operand.vmem [shape: bf16[2,18,32,16], index: 0, kind: input, shape index: {}]   ;;  %s2766_s1 = inlined_call_operand.vmem [shape: bf16[16,16], index: 1, kind: input, shape index: {}]   ;;  %s2767_s2 = inlined_call_operand.vmem [shape: f32[1,16], index: 2, kind: input, shape index: {}]   ;;  %s2768_s3 = inlined_call_operand.vmem [shape: f32[9,1,16], index: 3, kind: input, shape index: {}]   ;;  %s2769_s4 = inlined_call_operand.vmem [shape: f32[1,1,16], index: 4, kind: input, shape index: {}]   ;;  %s2770_s5 = inlined_call_operand.vmem [shape: bf16[16,8], index: 5, kind: input, shape index: {}]   ;;  %s2771_s6 = inlined_call_operand.vmem [shape: f32[1,8], index: 6, kind: input, shape index: {}]   ;;  %s2772_s7 = inlined_call_operand.vmem [shape: f32[2,16,16,8], index: 7, kind: output, shape index: {}]  }
   0x1   :  { %s1904_s26 = smov 0   ;;  %s1906_s27 = smov 0  }
   0x2   :  { %s1908_s28 = smov 0  }
   0x3 LB: > { %s26_s29 = sadd.s32 1, %s1850_s26  ;;  %s29_s30 = sadd.s32 1, %s1854_s27  ;;  %s1858_s28 = sphi %s1908_s28, %s17_s28   ;;  %s1854_s27 = sphi %s1906_s27, %s2875_s27   ;;  %s1850_s26 = sphi %s1904_s26, %s2874_s26   ;;  %s1846_s25 = sphi %s1902_s25, %s2873_s25   ;;  %s1842_s24 = sphi %s1900_s24, %s2872_s24  }
   0x4   : > { %p27_p0 = scmp.ge.s32.totalorder %s26_s29, 2  ;;  %p1604_p1 = scmp.ge.s32.totalorder %s1858_s28, 1 }
   0x5   : > { %p251_p2 = scmp.lt.s32.totalorder %s1858_s28, 5 }
   0x6   : > { %s2877_s29 = smov (%p27_p0, %s26_s29), 0  ;;  %s2879_s30 = smov (!%p27_p0, %s29_s30), %s1854_s27 }
   0x7   : > { %p252_p3 = pnand %p1604_p1, %p251_p2  ;;  %p31_p4 = scmp.ge.s32.totalorder %s2879_s30, 2 }
   0x9   : > { %s2881_s30 = smov (%p31_p4, %s2879_s30), 0  ;;  %255 = sbr.rel (%p252_p3) target bundleno = 497 (0x1f1), region = 48 }
   0xe   : > { %v1761_v0 = vld [vmem:[%s2766_s1] sm:$0xff]  ;;  %p288_p5 = scmp.lt.s32.totalorder %s1846_s25, 1  ;;  %s1740_s11 = sshll.u32 %s1842_s24, 7  ;;  %vm461_vm0 = vcmask 130048   ;;  %v681_v21 = vlaneseq }
   0xf   : > { %529 = vmatpush.bf16.msra.mxu0 %v1761_v0  ;;  %1763 = vmatpush.bf16.msra.mxu2 %v1761_v0  ;;  %s1985_s16 = sshll.u32 %s1842_s24, 3  ;;  %v1997_v24 = vld [vmem:[%s2767_s2] ss:$0 sm:$0xff] }
  0x10   : > { %s2883_s25 = smov (!%p288_p5, %s1846_s25), 1  ;;  %1764 = vmatpush.bf16.msra.mxu3 %v1761_v0  ;;  %v1988_v22 = vstv %s1985_s16  ;;  %v1990_v23 = vshrl.u32 %v681_v21, 7  ;;  %p296_p6 = scmp.lt.s32.totalorder %s1985_s16, 15 }
  0x11   : > { %s1766_s10 = smul.u32 288, %s2883_s25  ;;  %vm686_vm1 = vcmp.ge.s32.totalorder %v1988_v22, 1  ;;  %vm696_vm2 = vcmp.lt.s32.totalorder %v1988_v22, 17  ;;  %v674_v25 = vadd.s32 3, %v1988_v22  ;;  %v678_v27 = vadd.s32 7, %v1988_v22  ;;  %s1608_s9 = sshll.u32 %s2883_s25, 5 }
  0x12   : > { %vm2000_vm3 = vmand %vm686_vm1, %vm696_vm2  ;;  %vm716_vm4 = vcmp.ge.s32.totalorder %v1990_v23, 1  ;;  %v2012_v31 = vadd.s32 16, %v1990_v23  ;;  %v675_v48 = vadd.s32 4, %v1988_v22  ;;  %v672_v62 = vadd.s32 1, %v1988_v22  ;;  %s2885_s16 = smov (!%p296_p6, %s1985_s16), 15 }
  0x13   : > { %s292_s14 = scalar_lea.vmem %s2765_s0, %s1766_s10  ;;  %vm720_vm5 = vmand %vm2000_vm3, %vm716_vm4  ;;  %vm689_vm6 = vcmp.ge.s32.totalorder %v674_v25, 1  ;;  %vm699_vm7 = vcmp.lt.s32.totalorder %v674_v25, 17  ;;  %vm693_vm8 = vcmp.ge.s32.totalorder %v678_v27, 1  ;;  %vm703_vm9 = vcmp.lt.s32.totalorder %v678_v27, 17  ;;  %s1607_s8 = sshll.u32 %s2885_s16, 1 }
  0x14   : > { %s1942_s15 = scalar_lea.vmem %s292_s14, %s1740_s11  ;;  %vm2014_vm10 = vmand %vm689_vm6, %vm699_vm7  ;;  %vm762_vm12 = vcmp.lt.s32.totalorder %v2012_v31, 17  ;;  %vm690_vm1 = vcmp.ge.s32.totalorder %v675_v48, 1  ;;  %vm700_vm2 = vcmp.lt.s32.totalorder %v675_v48, 17  ;;  %vm687_vm7 = vcmp.ge.s32.totalorder %v672_v62, 1  ;;  %s300_s10 = sadd.s32 %s1608_s9, %s1607_s8 }
  0x15   : > { %v1741_v1 = vld [vmem:[%s1942_s15] sm:$0xff]  ;;  %v1748_v2 = vld [vmem:[%s1942_s15 + $0x38] sm:$0xff]  ;;  %v1755_v3 = vld [vmem:[%s1942_s15 + $0x70] sm:$0xff]  ;;  %v673_v48 = vadd.s32 2, %v1988_v22  ;;  %s1609_s13 = sshll.u32 %s300_s10, 3 }
  0x16   : > { %1697 = vmatmul.msk.bf16.vlgmr.msra.gmra.mxu0 %vm461_vm0, %v1741_v1  ;;  %1704 = vmatmul.msk.bf16.vlgmr.msra.gmra.mxu2 %vm461_vm0, %v1748_v2  ;;  %v1742_v4 = vld [vmem:[%s1942_s15 + $0x8] sm:$0xff]  ;;  %v1749_v5 = vld [vmem:[%s1942_s15 + $0x40] sm:$0xff]  ;;  %v1756_v6 = vld [vmem:[%s1942_s15 + $0x78] sm:$0xff]  ;;  %s2701_s17 = scalar_lea.vmem %s2772_s7, %s1609_s13 }
  0x17   : > { %1711 = vmatmul.msk.bf16.vlgmr.msra.gmra.mxu3 %vm461_vm0, %v1755_v3  ;;  %v1743_v7 = vld [vmem:[%s1942_s15 + $0x10] sm:$0xff]  ;;  %v1750_v8 = vld [vmem:[%s1942_s15 + $0x48] sm:$0xff]  ;;  %v1757_v9 = vld [vmem:[%s1942_s15 + $0x80] sm:$0xff] }
  0x18   : > { %v1744_v10 = vld [vmem:[%s1942_s15 + $0x18] sm:$0xff]  ;;  %v1751_v11 = vld [vmem:[%s1942_s15 + $0x50] sm:$0xff]  ;;  %v1758_v12 = vld [vmem:[%s1942_s15 + $0x88] sm:$0xff] }
  0x19   : > { %v1745_v13 = vld [vmem:[%s1942_s15 + $0x20] sm:$0xff]  ;;  %v1752_v14 = vld [vmem:[%s1942_s15 + $0x58] sm:$0xff]  ;;  %v1759_v15 = vld [vmem:[%s1942_s15 + $0x90] sm:$0xff] }
  0x1a   : > { %v1746_v16 = vld [vmem:[%s1942_s15 + $0x28] sm:$0xff]  ;;  %v1753_v17 = vld [vmem:[%s1942_s15 + $0x60] sm:$0xff]  ;;  %v1760_v18 = vld [vmem:[%s1942_s15 + $0x98] sm:$0xff] }
  0x1b   : > { %v1747_v19 = vld [vmem:[%s1942_s15 + $0x30] sm:$0xff]  ;;  %v1754_v20 = vld [vmem:[%s1942_s15 + $0x68] sm:$0xff]  ;;  %vm2019_vm11 = vmand %vm693_vm8, %vm703_vm9  ;;  %vm697_vm8 = vcmp.lt.s32.totalorder %v672_v62, 17 }
  0x1c   : > { %vm778_vm13 = vmand %vm2014_vm10, %vm762_vm12  ;;  %v2141_v62 = vld [vmem:[%s2768_s3 + $0x1] ss:$0 sm:$0xff] }
  0x1d   : > { %vm748_vm14 = vmand %vm2019_vm11, %vm716_vm4 }
  0x1e   : > { %vm766_vm15 = vmand %vm2000_vm3, %vm762_vm12 }
  0x1f   : > { %vm794_vm6 = vmand %vm2019_vm11, %vm762_vm12 }
  0x20   : > { %vm2069_vm9 = vmand %vm687_vm7, %vm697_vm8 }
  0x26   : > { %1698 = vmatmul.msk.bf16.gmra.mxu0 %vm461_vm0, %v1742_v4  ;;  %1705 = vmatmul.msk.bf16.gmra.mxu2 %vm461_vm0, %v1749_v5 }
  0x27   : > { %1712 = vmatmul.msk.bf16.gmra.mxu3 %vm461_vm0, %v1756_v6 }
  0x36   : > { %1699 = vmatmul.msk.bf16.gmra.mxu0 %vm461_vm0, %v1743_v7  ;;  %1706 = vmatmul.msk.bf16.gmra.mxu2 %vm461_vm0, %v1750_v8  ;;  %v679_v8 = vadd.s32 8, %v1988_v22 }
  0x37   : > { %1713 = vmatmul.msk.bf16.gmra.mxu3 %vm461_vm0, %v1757_v9 }
  0x46   : > { %1700 = vmatmul.msk.bf16.gmra.mxu0 %vm461_vm0, %v1744_v10  ;;  %1707 = vmatmul.msk.bf16.gmra.mxu2 %vm461_vm0, %v1751_v11 }
  0x47   : > { %1714 = vmatmul.msk.bf16.gmra.mxu3 %vm461_vm0, %v1758_v12 }
  0x56   : > { %1701 = vmatmul.msk.bf16.gmra.mxu0 %vm461_vm0, %v1745_v13  ;;  %1708 = vmatmul.msk.bf16.gmra.mxu2 %vm461_vm0, %v1752_v14 }
  0x57   : > { %1715 = vmatmul.msk.bf16.gmra.mxu3 %vm461_vm0, %v1759_v15 }
  0x66   : > { %1702 = vmatmul.msk.bf16.gmra.mxu0 %vm461_vm0, %v1746_v16  ;;  %1709 = vmatmul.msk.bf16.gmra.mxu2 %vm461_vm0, %v1753_v17 }
  0x67   : > { %1716 = vmatmul.msk.bf16.gmra.mxu3 %vm461_vm0, %v1760_v18 }
  0x76   : > { %1703 = vmatmul.msk.bf16.gmra.mxu0 %vm461_vm0, %v1747_v19  ;;  %1710 = vmatmul.msk.bf16.gmra.mxu2 %vm461_vm0, %v1754_v20 }
  0x93   : > { %v531_v28 = vpop.f32.mrf.mxu0 }
  0x94   : > { %v532_v29 = vadd.f32 %v1997_v24, %v531_v28 }
  0x96   : > { %v631_v30 = vmax.f32 %v532_v29, 0.0 }
  0x98   : > { %v804_v32 = vsel %vm720_vm5, %v631_v30, 0.0  ;;  %vm2049_vm5 = vmand %vm690_vm1, %vm700_vm2 }
  0x99   : > { %844 = vst.msk [vmem:[#allocation2] sm:$0xff] %vm461_vm0, %v804_v32  ;;  %v566_v34 = vpop.f32.mrf.mxu2  ;;  %vm782_vm1 = vmand %vm2049_vm5, %vm762_vm12 }
  0x9a   : > { %v567_v36 = vadd.f32 %v1997_v24, %v566_v34  ;;  %v601_v37 = vpop.f32.mrf.mxu3  ;;  %v676_v34 = vadd.s32 5, %v1988_v22 }
  0x9b   : > { %v533_v38 = vpop.f32.mrf.mxu0  ;;  %v602_v39 = vadd.f32 %v1997_v24, %v601_v37 }
  0x9c   : > { %v645_v40 = vmax.f32 %v567_v36, 0.0  ;;  %v534_v41 = vadd.f32 %v1997_v24, %v533_v38 }
  0x9d   : > { %v659_v42 = vmax.f32 %v602_v39, 0.0 }
  0x9e   : > { %v818_v43 = vsel %vm778_vm13, %v645_v40, 0.0  ;;  %v632_v44 = vmax.f32 %v534_v41, 0.0  ;;  %vm694_vm13 = vcmp.ge.s32.totalorder %v679_v8, 1 }
  0x9f   : > { %858 = vst.msk [vmem:[#allocation2 + $0x70] sm:$0xff] %vm461_vm0, %v818_v43  ;;  %v832_v45 = vsel %vm748_vm14, %v659_v42, 0.0  ;;  %vm704_vm14 = vcmp.lt.s32.totalorder %v679_v8, 17  ;;  %v2365_v8 = vld [vmem:[%s2768_s3 + $0x8] ss:$0 sm:$0xff] }
  0xa0   : > { %v805_v46 = vsel %vm2000_vm3, %v632_v44, 0.0  ;;  %872 = vst.msk [vmem:[#allocation2 + $0xe0] sm:$0xff] %vm461_vm0, %v832_v45  ;;  %vm736_vm3 = vmand %vm2049_vm5, %vm716_vm4 }
  0xa1   : > { %845 = vst.msk [vmem:[#allocation2 + $0x8] sm:$0xff] %vm461_vm0, %v805_v46  ;;  %v568_v47 = vpop.f32.mrf.mxu2 }
  0xa2   : > { %v603_v49 = vpop.f32.mrf.mxu3 }
  0xa3   : > { %v536_v50 = vpop.f32.mrf.mxu0  ;;  %v604_v51 = vadd.f32 %v1997_v24, %v603_v49 }
  0xa4   : > { %v537_v52 = vadd.f32 %v1997_v24, %v536_v50 }
  0xa5   : > { %v660_v53 = vmax.f32 %v604_v51, 0.0 }
  0xa6   : > { %v633_v54 = vmax.f32 %v537_v52, 0.0 }
  0xa7   : > { %v833_v55 = vsel %vm2019_vm11, %v660_v53, 0.0  ;;  %vm724_vm11 = vmand %vm2069_vm9, %vm716_vm4 }
  0xa8   : > { %v806_v56 = vsel %vm766_vm15, %v633_v54, 0.0  ;;  %873 = vst.msk [vmem:[#allocation2 + $0xe8] sm:$0xff] %vm461_vm0, %v833_v55  ;;  %vm2083_vm15 = vmand %vm694_vm13, %vm704_vm14  ;;  %vm698_vm13 = vcmp.lt.s32.totalorder %v673_v48, 17  ;;  %v989_v16 = vld [vmem:[#allocation2 + $0x2] sm:$0xff] }
  0xa9   : > { %846 = vst.msk [vmem:[#allocation2 + $0x10] sm:$0xff] %vm461_vm0, %v806_v56  ;;  %v571_v58 = vpop.f32.mrf.mxu2  ;;  %vm752_vm2 = vmand %vm2083_vm15, %vm716_vm4 }
  0xaa   : > { %v572_v59 = vadd.f32 %v1997_v24, %v571_v58  ;;  %v606_v60 = vpop.f32.mrf.mxu3  ;;  %v680_v58 = vadd.s32 9, %v1988_v22 }
  0xab   : > { %v538_v61 = vpop.f32.mrf.mxu0  ;;  %v607_v63 = vadd.f32 %v1997_v24, %v606_v60 }
  0xac   : > { %v647_v0 = vmax.f32 %v572_v59, 0.0 }
  0xad   : > { %v661_v1 = vmax.f32 %v607_v63, 0.0  ;;  %v2150_v63 = vld [vmem:[%s2768_s3] ss:$0 sm:$0xff] }
  0xae   : > { %v820_v2 = vsel %vm736_vm3, %v647_v0, 0.0  ;;  %vm691_vm3 = vcmp.ge.s32.totalorder %v676_v34, 1  ;;  %v936_v0 = vld [vmem:[#allocation2 + $0x1] sm:$0xff] }
  0xaf   : > { %860 = vst.msk [vmem:[#allocation2 + $0x80] sm:$0xff] %vm461_vm0, %v820_v2  ;;  %v834_v3 = vsel %vm794_vm6, %v661_v1, 0.0  ;;  %vm701_vm6 = vcmp.lt.s32.totalorder %v676_v34, 17  ;;  %v957_v6 = vmul.f32 %v2141_v62, %v936_v0 }
  0xb0   : > { %874 = vst.msk [vmem:[#allocation2 + $0xf0] sm:$0xff] %vm461_vm0, %v834_v3  ;;  %vm2112_vm7 = vmand %vm691_vm3, %vm701_vm6  ;;  %v1762_v3 = vld [vmem:[%s2770_s5] sm:$0xff] }
  0xb1   : > { %v573_v4 = vpop.f32.mrf.mxu2  ;;  %vm740_vm8 = vmand %vm2112_vm7, %vm716_vm4  ;;  %1433 = vmatpush.bf16.msra.mxu1 %v1762_v3  ;;  %1765 = vmatpush.bf16.msrb.mxu3 %v1762_v3 }
  0xb2   : > { %v574_v5 = vadd.f32 %v1997_v24, %v573_v4  ;;  %v608_v7 = vpop.f32.mrf.mxu3  ;;  %v884_v4 = vld [vmem:[#allocation2] sm:$0xff]  ;;  %vm2179_vm3 = vmand %vm2112_vm7, %vm762_vm12 }
  0xb3   : > { %v541_v9 = vpop.f32.mrf.mxu0 }
  0xb4   : > { %v648_v10 = vmax.f32 %v574_v5, 0.0  ;;  %v542_v11 = vadd.f32 %v1997_v24, %v541_v9  ;;  %v2167_v9 = vld [vmem:[%s2768_s3 + $0x2] ss:$0 sm:$0xff] }
  0xb6   : > { %v821_v12 = vsel %vm2049_vm5, %v648_v10, 0.0  ;;  %v635_v13 = vmax.f32 %v542_v11, 0.0  ;;  %vm770_vm5 = vmand %vm2069_vm9, %vm762_vm12  ;;  %v2172_v10 = vld [vmem:[%s2768_s3 + $0x3] ss:$0 sm:$0xff] }
  0xb7   : > { %861 = vst.msk [vmem:[#allocation2 + $0x88] sm:$0xff] %vm461_vm0, %v821_v12 }
  0xb8   : > { %v808_v14 = vsel %vm724_vm11, %v635_v13, 0.0  ;;  %vm688_vm11 = vcmp.ge.s32.totalorder %v673_v48, 1  ;;  %v1010_v48 = vmul.f32 %v2167_v9, %v989_v16 }
  0xb9   : > { %848 = vst.msk [vmem:[#allocation2 + $0x20] sm:$0xff] %vm461_vm0, %v808_v14  ;;  %v576_v15 = vpop.f32.mrf.mxu2  ;;  %vm2132_vm14 = vmand %vm688_vm11, %vm698_vm13  ;;  %v904_v14 = vmul.f32 %v2150_v63, %v884_v4 }
  0xba   : > { %v577_v17 = vadd.f32 %v1997_v24, %v576_v15  ;;  %v611_v18 = vpop.f32.mrf.mxu3  ;;  %v937_v15 = vld [vmem:[#allocation2 + $0x9] sm:$0xff] }
  0xbb   : > { %v543_v19 = vpop.f32.mrf.mxu0  ;;  %v612_v20 = vadd.f32 %v1997_v24, %v611_v18 }
  0xbc   : > { %v649_v21 = vmax.f32 %v577_v17, 0.0  ;;  %v544_v25 = vadd.f32 %v1997_v24, %v543_v19  ;;  %v2185_v19 = vld [vmem:[#allocation2 + $0xe0] sm:$0xff] }
  0xbd   : > { %v663_v26 = vmax.f32 %v612_v20, 0.0  ;;  %v2187_v20 = vld [vmem:[#allocation2 + $0xe8] sm:$0xff] }
  0xbe   : > { %v822_v27 = vsel %vm782_vm1, %v649_v21, 0.0  ;;  %v636_v28 = vmax.f32 %v544_v25, 0.0  ;;  %vm695_vm1 = vcmp.ge.s32.totalorder %v680_v58, 1  ;;  %v2189_v21 = vld [vmem:[#allocation2 + $0xe1] sm:$0xff] }
  0xbf   : > { %862 = vst.msk [vmem:[#allocation2 + $0x90] sm:$0xff] %vm461_vm0, %v822_v27  ;;  %v836_v29 = vsel %vm752_vm2, %v663_v26, 0.0  ;;  %vm705_vm2 = vcmp.lt.s32.totalorder %v680_v58, 17 }
  0xc0   : > { %v809_v30 = vsel %vm2069_vm9, %v636_v28, 0.0  ;;  %876 = vst.msk [vmem:[#allocation2 + $0x100] sm:$0xff] %vm461_vm0, %v836_v29  ;;  %vm798_vm9 = vmand %vm2083_vm15, %vm762_vm12  ;;  %v973_v28 = vadd.f32 %v957_v6, %v904_v14  ;;  %v1043_v29 = vld [vmem:[#allocation2 + $0x20] sm:$0xff] }
  0xc1   : > { %849 = vst.msk [vmem:[#allocation2 + $0x28] sm:$0xff] %vm461_vm0, %v809_v30  ;;  %v578_v32 = vpop.f32.mrf.mxu2  ;;  %v918_v30 = vmul.f32 %v2150_v63, %v2185_v19  ;;  %v2251_v14 = vld [vmem:[%s2768_s3 + $0x5] ss:$0 sm:$0xff]  ;;  %v906_v16 = vmul.f32 %v2150_v63, %v1043_v29 }
  0xc2   : > { %v613_v35 = vpop.f32.mrf.mxu3  ;;  %v2202_v32 = vld [vmem:[#allocation2 + $0xe9] sm:$0xff] }
  0xc3   : > { %v546_v36 = vpop.f32.mrf.mxu0  ;;  %v614_v37 = vadd.f32 %v1997_v24, %v613_v35  ;;  %v885_v35 = vld [vmem:[#allocation2 + $0x8] sm:$0xff] }
  0xc4   : > { %v547_v38 = vadd.f32 %v1997_v24, %v546_v36  ;;  %v958_v36 = vmul.f32 %v2141_v62, %v937_v15 }
  0xc5   : > { %v664_v39 = vmax.f32 %v614_v37, 0.0  ;;  %v2208_v37 = vld [vmem:[%s2768_s3 + $0x4] ss:$0 sm:$0xff] }
  0xc6   : > { %v637_v40 = vmax.f32 %v547_v38, 0.0  ;;  %v919_v38 = vmul.f32 %v2150_v63, %v2187_v20 }
  0xc7   : > { %v837_v41 = vsel %vm2083_vm15, %v664_v39, 0.0  ;;  %vm728_vm15 = vmand %vm2132_vm14, %vm716_vm4  ;;  %v971_v39 = vmul.f32 %v2141_v62, %v2189_v21 }
  0xc8   : > { %v810_v42 = vsel %vm770_vm5, %v637_v40, 0.0  ;;  %877 = vst.msk [vmem:[#allocation2 + $0x108] sm:$0xff] %vm461_vm0, %v837_v41  ;;  %vm2160_vm5 = vmand %vm695_vm1, %vm705_vm2  ;;  %v2214_v40 = vld [vmem:[#allocation2 + $0xe2] sm:$0xff] }
  0xc9   : > { %850 = vst.msk [vmem:[#allocation2 + $0x30] sm:$0xff] %vm461_vm0, %v810_v42  ;;  %v581_v44 = vpop.f32.mrf.mxu2  ;;  %vm2196_vm6 = vmand %vm2160_vm5, %vm716_vm4  ;;  %v1096_v43 = vld [vmem:[#allocation2 + $0x21] sm:$0xff] }
  0xca   : > { %v582_v45 = vadd.f32 %v1997_v24, %v581_v44  ;;  %v616_v46 = vpop.f32.mrf.mxu3  ;;  %v972_v44 = vmul.f32 %v2141_v62, %v2202_v32 }
  0xcb   : > { %v548_v47 = vpop.f32.mrf.mxu0  ;;  %v617_v49 = vadd.f32 %v1997_v24, %v616_v46 }
  0xcc   : > { %v651_v50 = vmax.f32 %v582_v45, 0.0  ;;  %v1024_v45 = vmul.f32 %v2167_v9, %v2214_v40  ;;  %v990_v47 = vld [vmem:[#allocation2 + $0xa] sm:$0xff] }
  0xcd   : > { %v665_v51 = vmax.f32 %v617_v49, 0.0  ;;  %v1064_v49 = vmul.f32 %v2172_v10, %v1043_v29  ;;  %v1011_v4 = vmul.f32 %v2167_v9, %v990_v47 }
  0xce   : > { %v824_v52 = vsel %vm740_vm8, %v651_v50, 0.0  ;;  %v987_v50 = vadd.f32 %v971_v39, %v918_v30  ;;  %vm2265_vm8 = vmand %vm2132_vm14, %vm762_vm12 }
  0xcf   : > { %864 = vst.msk [vmem:[#allocation2 + $0xa0] sm:$0xff] %vm461_vm0, %v824_v52  ;;  %v838_v53 = vsel %vm798_vm9, %v665_v51, 0.0  ;;  %v2227_v51 = vld [vmem:[#allocation2 + $0xea] sm:$0xff]  ;;  %v2229_v52 = vld [vmem:[#allocation2 + $0x100] sm:$0xff] }
  0xd0   : > { %878 = vst.msk [vmem:[#allocation2 + $0x110] sm:$0xff] %vm461_vm0, %v838_v53  ;;  %v1078_v58 = vmul.f32 %v2172_v10, %v2229_v52  ;;  %v1040_v0 = vadd.f32 %v1024_v45, %v987_v50  ;;  %v1025_v6 = vmul.f32 %v2167_v9, %v2227_v51  ;;  %v2253_v15 = vld [vmem:[#allocation2 + $0x108] sm:$0xff] }
  0xd1   : > { %v583_v54 = vpop.f32.mrf.mxu2  ;;  %2823 = vst [vmem:[#allocation4_spill] sm:$0xff] %v2253_v15 }
  0xd2   : > { %v584_v55 = vadd.f32 %v1997_v24, %v583_v54  ;;  %v618_v57 = vpop.f32.mrf.mxu3  ;;  %v677_v54 = vadd.s32 6, %v1988_v22 }
  0xd3   : > { %v551_v59 = vpop.f32.mrf.mxu0  ;;  %v1044_v57 = vld [vmem:[#allocation2 + $0x28] sm:$0xff] }
  0xd4   : > { %v652_v60 = vmax.f32 %v584_v55, 0.0  ;;  %v552_v61 = vadd.f32 %v1997_v24, %v551_v59  ;;  %v905_v55 = vmul.f32 %v2150_v63, %v885_v35  ;;  %v1065_v12 = vmul.f32 %v2172_v10, %v1044_v57  ;;  %v2274_v35 = vld [vmem:[#allocation2 + $0x102] sm:$0xff] }
  0xd5   : > { %vm702_vm9 = vcmp.lt.s32.totalorder %v677_v54, 17  ;;  %2826 = vst [vmem:[#allocation5_spill] sm:$0xff] %v2274_v35 }
  0xd6   : > { %v825_v1 = vsel %vm2112_vm7, %v652_v60, 0.0  ;;  %v639_v2 = vmax.f32 %v552_v61, 0.0  ;;  %v1026_v60 = vadd.f32 %v1010_v48, %v973_v28  ;;  %v1117_v61 = vmul.f32 %v2208_v37, %v1096_v43 }
  0xd7   : > { %865 = vst.msk [vmem:[#allocation2 + $0xa8] sm:$0xff] %vm461_vm0, %v825_v1  ;;  %v2240_v1 = vld [vmem:[#allocation2 + $0x101] sm:$0xff]  ;;  %v974_v3 = vadd.f32 %v958_v36, %v905_v55  ;;  %vm692_vm7 = vcmp.ge.s32.totalorder %v677_v54, 1  ;;  %v2290_v47 = vld [vmem:[#allocation2 + $0x109] sm:$0xff] }
  0xd8   : > { %v812_v5 = vsel %vm728_vm15, %v639_v2, 0.0  ;;  %2822 = vst [vmem:[#allocation3_spill] sm:$0xff] %v2240_v1  ;;  %v959_v2 = vmul.f32 %v2141_v62, %v1096_v43  ;;  %v1131_v27 = vmul.f32 %v2208_v37, %v2240_v1  ;;  %vm2297_vm11 = vmand %vm692_vm7, %vm702_vm9  ;;  %v2338_v28 = vld [vmem:[#allocation2 + $0x10a] sm:$0xff] }
  0xd9   : > { %852 = vst.msk [vmem:[#allocation2 + $0x40] sm:$0xff] %vm461_vm0, %v812_v5  ;;  %v586_v7 = vpop.f32.mrf.mxu2  ;;  %v988_v5 = vadd.f32 %v972_v44, %v919_v38  ;;  %v1027_v39 = vadd.f32 %v1011_v4, %v974_v3  ;;  %v2314_v3 = vld [vmem:[#allocation2 + $0x80] sm:$0xff]  ;;  %vm2331_vm13 = vmand %vm2297_vm11, %vm716_vm4 }
  0xda   : > { %v587_v11 = vadd.f32 %v1997_v24, %v586_v7  ;;  %v621_v13 = vpop.f32.mrf.mxu3  ;;  %v975_v36 = vadd.f32 %v959_v2, %v906_v16  ;;  %2827 = vst [vmem:[#allocation6_spill] sm:$0xff] %v2290_v47  ;;  %vm2429_vm15 = vmand %vm2014_vm10, %vm716_vm4 }
  0xdb   : > { %v553_v17 = vpop.f32.mrf.mxu0  ;;  %v622_v18 = vadd.f32 %v1997_v24, %v621_v13  ;;  %v1080_v13 = vadd.f32 %v1064_v49, %v1026_v60  ;;  %v1041_v56 = vadd.f32 %v1025_v6, %v988_v5  ;;  %2830 = vst [vmem:[#allocation7_spill] sm:$0xff] %v2314_v3  ;;  %v1150_v6 = vld [vmem:[#allocation2 + $0x2a] sm:$0xff]  ;;  %vm790_vm4 = vmand %vm2297_vm11, %vm762_vm12 }
  0xdc   : > { %v653_v25 = vmax.f32 %v587_v11, 0.0  ;;  %v554_v26 = vadd.f32 %v1997_v24, %v553_v17  ;;  %2834 = vst [vmem:[#allocation9_spill] sm:$0xff] %v2338_v28 }
  0xdd   : > { %v667_v34 = vmax.f32 %v622_v18, 0.0  ;;  %v2257_v18 = vld [vmem:[#allocation2 + $0x29] sm:$0xff]  ;;  %v1133_v30 = vadd.f32 %v1117_v61, %v1080_v13  ;;  %v1081_v61 = vadd.f32 %v1065_v12, %v1027_v39 }
  0xde   : > { %v826_v41 = vsel %vm2179_vm3, %v653_v25, 0.0  ;;  %v640_v42 = vmax.f32 %v554_v26, 0.0  ;;  %v1149_v25 = vld [vmem:[#allocation2 + $0x22] sm:$0xff]  ;;  %v1094_v26 = vadd.f32 %v1078_v58, %v1040_v0  ;;  %v1118_v44 = vmul.f32 %v2208_v37, %v2257_v18 }
  0xdf   : > { %866 = vst.msk [vmem:[#allocation2 + $0xb0] sm:$0xff] %vm461_vm0, %v826_v41  ;;  %v840_v46 = vsel %vm2196_vm6, %v667_v34, 0.0  ;;  %v2272_v34 = vld [vmem:[%s2768_s3 + $0x6] ss:$0 sm:$0xff]  ;;  %v1170_v45 = vmul.f32 %v2251_v14, %v1149_v25  ;;  %v1012_v48 = vmul.f32 %v2167_v9, %v1149_v25  ;;  %v1184_v58 = vmul.f32 %v2251_v14, %v2274_v35  ;;  %v2321_v12 = vld [vmem:[#allocation2 + $0x88] sm:$0xff] }
  0xe0   : > { %v813_v53 = vsel %vm2132_vm14, %v640_v42, 0.0  ;;  %880 = vst.msk [vmem:[#allocation2 + $0x120] sm:$0xff] %vm461_vm0, %v840_v46  ;;  %v2276_v41 = vld [vmem:[#allocation2 + $0x40] sm:$0xff]  ;;  %v1079_v42 = vmul.f32 %v2172_v10, %v2253_v15  ;;  %v1147_v55 = vadd.f32 %v1131_v27, %v1094_v26  ;;  %v2325_v13 = vmul.f32 %v2272_v34, %v2314_v3  ;;  %vm2350_vm14 = vmand %vm2160_vm5, %vm762_vm12 }
  0xe1   : > { %853 = vst.msk [vmem:[#allocation2 + $0x48] sm:$0xff] %vm461_vm0, %v813_v53  ;;  %v588_v59 = vpop.f32.mrf.mxu2  ;;  %v2288_v46 = vld [vmem:[%s2768_s3 + $0x7] ss:$0 sm:$0xff]  ;;  %v1186_v54 = vadd.f32 %v1170_v45, %v1133_v30  ;;  %v1224_v0 = vmul.f32 %v2272_v34, %v2276_v41  ;;  %v1134_v26 = vadd.f32 %v1118_v44, %v1081_v61  ;;  %v1171_v44 = vmul.f32 %v2251_v14, %v1150_v6  ;;  %v2415_v35 = vld [vmem:[%s2769_s4] ss:$0 sm:$0xff] }
  0xe2   : > { %v623_v22 = vpop.f32.mrf.mxu3  ;;  %v2307_v59 = vmul.f32 %v2150_v63, %v1044_v57  ;;  %v1095_v57 = vadd.f32 %v1079_v42, %v1041_v56  ;;  %2831 = vst [vmem:[#allocation8_spill] sm:$0xff] %v2321_v12  ;;  %v2344_v30 = vld [vmem:[#allocation2 + $0x81] sm:$0xff]  ;;  %v1200_v39 = vadd.f32 %v1184_v58, %v1147_v55  ;;  %v2369_v55 = vld [vmem:[#allocation2 + $0x8a] sm:$0xff] }
  0xe3   : > { %v556_v7 = vpop.f32.mrf.mxu0  ;;  %v624_v11 = vadd.f32 %v1997_v24, %v623_v22  ;;  %v2312_v22 = vadd.f32 %v1012_v48, %v975_v36  ;;  %v2357_v42 = vmul.f32 %v2288_v46, %v2344_v30  ;;  %v1240_v48 = vadd.f32 %v1224_v0, %v1186_v54  ;;  %2838 = vst [vmem:[#allocation11_spill] sm:$0xff] %v2369_v55  ;;  %v2379_v0 = vld [vmem:[#allocation2 + $0x89] sm:$0xff] }
  0xe4   : > { %v557_v17 = vadd.f32 %v1997_v24, %v556_v7  ;;  %v960_v54 = vmul.f32 %v2141_v62, %v2257_v18 }
  0xe5   : > { %v668_v29 = vmax.f32 %v624_v11, 0.0  ;;  %v1132_v11 = vmul.f32 %v2208_v37, %v2290_v47 }
  0xe6   : > { %v641_v38 = vmax.f32 %v557_v17, 0.0  ;;  %v976_v47 = vadd.f32 %v960_v54, %v2307_v59  ;;  %v2421_v54 = vld [vmem:[#allocation2 + $0xa0] sm:$0xff] }
  0xe7   : > { %v841_v43 = vsel %vm2160_vm5, %v668_v29, 0.0  ;;  %v1217_v2 = vld [vmem:[#allocation2 + $0x120] sm:$0xff]  ;;  %v2342_v29 = vmul.f32 %v2272_v34, %v2321_v12  ;;  %v1148_v61 = vadd.f32 %v1132_v11, %v1095_v57  ;;  %v2386_v57 = vmul.f32 %v2288_v46, %v2379_v0  ;;  %2840 = vst [vmem:[#allocation13_spill] sm:$0xff] %v2421_v54 }
  0xe8   : > { %v814_v49 = vsel %vm2265_vm8, %v641_v38, 0.0  ;;  %881 = vst.msk [vmem:[#allocation2 + $0x128] sm:$0xff] %vm461_vm0, %v841_v43  ;;  %v2302_v53 = vld [vmem:[#allocation2 + $0x41] sm:$0xff]  ;;  %v1238_v56 = vmul.f32 %v2272_v34, %v1217_v2  ;;  %v1185_v2 = vmul.f32 %v2251_v14, %v2338_v28 }
  0xe9   : > { %854 = vst.msk [vmem:[#allocation2 + $0x50] sm:$0xff] %vm461_vm0, %v814_v49  ;;  %v591_v60 = vpop.f32.mrf.mxu2  ;;  %v2317_v7 = vld [vmem:[#allocation2 + $0x48] sm:$0xff]  ;;  %v1277_v27 = vmul.f32 %v2288_v46, %v2302_v53 }
  0xea   : > { %v592_v4 = vadd.f32 %v1997_v24, %v591_v60  ;;  %v626_v5 = vpop.f32.mrf.mxu3  ;;  %v1225_v45 = vmul.f32 %v2272_v34, %v2317_v7  ;;  %v2367_v49 = vld [vmem:[#allocation2 + $0x82] sm:$0xff] }
  0xeb   : > { %v558_v17 = vpop.f32.mrf.mxu0  ;;  %v627_v25 = vadd.f32 %v1997_v24, %v626_v5  ;;  %2837 = vst [vmem:[#allocation10_spill] sm:$0xff] %v2367_v49  ;;  %v2373_v60 = vld [vmem:[#allocation2 + $0x42] sm:$0xff]  ;;  %v1187_v5 = vadd.f32 %v1171_v44, %v1134_v26  ;;  %v2396_v38 = vmul.f32 %v2365_v8, %v2367_v49  ;;  %v2400_v26 = vmul.f32 %v2365_v8, %v2369_v55 }
  0xec   : > { %v655_v36 = vmax.f32 %v592_v4, 0.0  ;;  %v1293_v17 = vadd.f32 %v1277_v27, %v1240_v48  ;;  %v1330_v48 = vmul.f32 %v2365_v8, %v2373_v60 }
  0xed   : > { %v669_v43 = vmax.f32 %v627_v25, 0.0  ;;  %2839 = vst [vmem:[#allocation12_spill] sm:$0xff] %v2396_v38 }
  0xee   : > { %v828_v58 = vsel %vm2331_vm13, %v655_v36, 0.0  ;;  %v1254_v36 = vadd.f32 %v1238_v56, %v1200_v39  ;;  %v1013_v39 = vmul.f32 %v2167_v9, %v1150_v6  ;;  %v1066_v6 = vmul.f32 %v2172_v10, %v2276_v41 }
  0xef   : > { %868 = vst.msk [vmem:[#allocation2 + $0xc0] sm:$0xff] %vm461_vm0, %v828_v58  ;;  %v842_v4 = vsel %vm2350_vm14, %v669_v43, 0.0  ;;  %v1218_v16 = vld [vmem:[#allocation2 + $0x128] sm:$0xff]  ;;  %v1241_v43 = vadd.f32 %v1225_v45, %v1187_v5  ;;  %v1346_v5 = vadd.f32 %v1330_v48, %v1293_v17 }
  0xf0   : > { %v1270_v25 = vld [vmem:[#allocation2 + $0x121] sm:$0xff]  ;;  %882 = vst.msk [vmem:[#allocation2 + $0x130] sm:$0xff] %vm461_vm0, %v842_v4  ;;  %v2389_v11 = vld [vmem:[#allocation2 + $0x49] sm:$0xff]  ;;  %v1239_v28 = vmul.f32 %v2272_v34, %v1218_v16  ;;  %v1029_v48 = vadd.f32 %v1013_v39, %v976_v47 }
  0xf1   : > { %v2391_v18 = vld [vmem:[#allocation2 + $0x4a] sm:$0xff]  ;;  %v1291_v58 = vmul.f32 %v2288_v46, %v1270_v25  ;;  %v593_v27 = vpop.f32.mrf.mxu2  ;;  %v1278_v44 = vmul.f32 %v2288_v46, %v2389_v11  ;;  %v1323_v4 = vld [vmem:[#allocation2 + $0x122] sm:$0xff]  ;;  %v1201_v25 = vadd.f32 %v1185_v2, %v1148_v61 }
  0xf2   : > { %v594_v56 = vadd.f32 %v1997_v24, %v593_v27  ;;  %v628_v38 = vpop.f32.mrf.mxu3  ;;  %v1331_v45 = vmul.f32 %v2365_v8, %v2391_v18  ;;  %v1344_v59 = vmul.f32 %v2365_v8, %v1323_v4  ;;  %v2453_v39 = vld [vmem:[#allocation2 + $0xa2] sm:$0xff] }
  0xf3   : > { %v561_v55 = vpop.f32.mrf.mxu0  ;;  %v1294_v49 = vadd.f32 %v1278_v44, %v1241_v43  ;;  %v1307_v16 = vadd.f32 %v1291_v58, %v1254_v36  ;;  %v2423_v38 = vld [vmem:[#allocation2 + $0xa1] sm:$0xff]  ;;  %v2435_v43 = vmul.f32 %v2172_v10, %v2314_v3  ;;  %v1255_v44 = vadd.f32 %v1239_v28, %v1201_v25  ;;  %2844 = vst [vmem:[#allocation15_spill] sm:$0xff] %v2453_v39 }
  0xf4   : > { %v656_v61 = vmax.f32 %v594_v56, 0.0  ;;  %v562_v2 = vadd.f32 %v1997_v24, %v561_v55  ;;  %2841 = vst [vmem:[#allocation14_spill] sm:$0xff] %v2423_v38  ;;  %v914_v55 = vmul.f32 %v2150_v63, %v2421_v54  ;;  %v967_v36 = vmul.f32 %v2141_v62, %v2423_v38 }
  0xf5   : > { %v1347_v27 = vadd.f32 %v1331_v45, %v1294_v49  ;;  %v1366_v49 = vadd.f32 %v2415_v35, %v1346_v5  ;;  %v1082_v3 = vadd.f32 %v1066_v6, %v2312_v22  ;;  %v908_v54 = vmul.f32 %v2150_v63, %v2276_v41 }
  0xf6   : > { %v829_v23 = vsel %vm2297_vm11, %v656_v61, 0.0  ;;  %v643_v58 = vmax.f32 %v562_v2, 0.0  ;;  %v1360_v28 = vadd.f32 %v1344_v59, %v1307_v16  ;;  %v1067_v22 = vmul.f32 %v2172_v10, %v2317_v7  ;;  %v2465_v59 = vld [vmem:[#allocation2 + $0xa8] sm:$0xff] }
  0xf7   : > { %869 = vst.msk [vmem:[#allocation2 + $0xc8] sm:$0xff] %vm461_vm0, %v829_v23  ;;  %v1367_v4 = vadd.f32 %v2415_v35, %v1347_v27  ;;  %v1271_v56 = vld [vmem:[#allocation2 + $0x129] sm:$0xff]  ;;  %v983_v6 = vadd.f32 %v967_v36, %v914_v55  ;;  %v1020_v41 = vmul.f32 %v2167_v9, %v2453_v39  ;;  %v1119_v27 = vmul.f32 %v2208_v37, %v2302_v53  ;;  %v2469_v23 = vld [vmem:[#allocation2 + $0xc0] sm:$0xff] }
  0xf8   : > { %v1324_v45 = vld [vmem:[#allocation2 + $0x12a] sm:$0xff]  ;;  %v816_v38 = vsel %vm2429_vm15, %v643_v58, 0.0  ;;  %v1292_v61 = vmul.f32 %v2288_v46, %v1271_v56  ;;  %v1172_v16 = vmul.f32 %v2251_v14, %v2373_v60  ;;  %2845 = vst [vmem:[#allocation16_spill] sm:$0xff] %v2465_v59  ;;  %v915_v36 = vmul.f32 %v2150_v63, %v2465_v59 }
  0xf9   : > { %v1345_v47 = vmul.f32 %v2365_v8, %v1324_v45  ;;  %856 = vst.msk [vmem:[#allocation2 + $0x60] sm:$0xff] %vm461_vm0, %v816_v38  ;;  %v596_v25 = vpop.f32.mrf.mxu2  ;;  %v1382_v5 = vpack.c.bf16 %v1367_v4, %v1366_v49  ;;  %v2467_v38 = vld [vmem:[#allocation2 + $0xa9] sm:$0xff]  ;;  %v1074_v49 = vmul.f32 %v2172_v10, %v2469_v23  ;;  %v1380_v50 = vadd.f32 %v2415_v35, %v1360_v28 }
  0xfa   : > { %v597_v2 = vadd.f32 %v1997_v24, %v596_v25  ;;  %v1308_v17 = vadd.f32 %v1292_v61, %v1255_v44  ;;  %2846 = vst [vmem:[#allocation17_spill] sm:$0xff] %v2467_v38  ;;  %v968_v58 = vmul.f32 %v2141_v62, %v2467_v38  ;;  %v1036_v44 = vadd.f32 %v1020_v41, %v983_v6 }
  0xfb   : > { %2847 = vst [vmem:[#allocation18_spill] sm:$0xff] %v2469_v23  ;;  %v563_v55 = vpop.f32.mrf.mxu0  ;;  %1729 = vmatmul.msk.bf16.vlgmr.msra.gmra.mxu1 %vm461_vm0, %v1382_v5  ;;  %v1083_v45 = vadd.f32 %v1067_v22, %v1029_v48  ;;  %v1120_v61 = vmul.f32 %v2208_v37, %v2389_v11  ;;  %v961_v25 = vmul.f32 %v2141_v62, %v2302_v53 }
  0xfc   : > { %v657_v4 = vmax.f32 %v597_v2, 0.0  ;;  %v564_v56 = vadd.f32 %v1997_v24, %v563_v55  ;;  %v1361_v31 = vadd.f32 %v1345_v47, %v1308_v17  ;;  %v962_v5 = vmul.f32 %v2141_v62, %v2389_v11  ;;  %v2491_v2 = vld [vmem:[#allocation2 + $0xaa] sm:$0xff] }
  0xfd   : > { %2848 = vst [vmem:[#allocation19_spill] sm:$0xff] %v2491_v2  ;;  %v1090_v48 = vadd.f32 %v1074_v49, %v1036_v44  ;;  %v1135_v28 = vadd.f32 %v1119_v27, %v1082_v3  ;;  %v909_v53 = vmul.f32 %v2150_v63, %v2317_v7  ;;  %v984_v22 = vadd.f32 %v968_v58, %v915_v36 }
  0xfe   : > { %v830_v6 = vsel %vm790_vm4, %v657_v4, 0.0  ;;  %v644_v41 = vmax.f32 %v564_v56, 0.0  ;;  %v1381_v39 = vadd.f32 %v2415_v35, %v1361_v31  ;;  %v2493_v24 = vld [vmem:[#allocation2 + $0xc1] sm:$0xff]  ;;  %v1021_v11 = vmul.f32 %v2167_v9, %v2491_v2 }
  0xff   : > { %2849 = vst [vmem:[#allocation20_spill] sm:$0xff] %v2493_v24  ;;  %v2495_v47 = vld [vmem:[#allocation2 + $0xc2] sm:$0xff]  ;;  %v1127_v56 = vmul.f32 %v2208_v37, %v2493_v24  ;;  %v1136_v3 = vadd.f32 %v1120_v61, %v1083_v45  ;;  %v1173_v7 = vmul.f32 %v2251_v14, %v2391_v18  ;;  %v977_v27 = vadd.f32 %v961_v25, %v908_v54 }
 0x100   : > { %2850 = vst [vmem:[#allocation21_spill] sm:$0xff] %v2495_v47  ;;  %v817_v17 = vsel %vm2014_vm10, %v644_v41, 0.0  ;;  %v1389_v55 = vpack.c.bf16 %v1381_v39, %v1380_v50  ;;  %v1205_v4 = vld [vmem:[#allocation2 + $0x60] sm:$0xff]  ;;  %v1180_v44 = vmul.f32 %v2251_v14, %v2495_v47  ;;  %v1014_v36 = vmul.f32 %v2167_v9, %v2373_v60  ;;  %v2516_v49 = vld [vmem:[#allocation2 + $0xc8] sm:$0xff] }
 0x101   : > { %870 = vst.msk [vmem:[#allocation2 + $0xd0] sm:$0xff] %vm461_vm0, %v830_v6  ;;  %v598_v33 = vpop.f32.mrf.mxu2  ;;  %v978_v39 = vadd.f32 %v962_v5, %v909_v53  ;;  %v1015_v58 = vmul.f32 %v2167_v9, %v2391_v18  ;;  %v1143_v31 = vadd.f32 %v1127_v56, %v1090_v48  ;;  %v1234_v50 = vmul.f32 %v2272_v34, %v2185_v19 }
 0x102   : > { %857 = vst.msk [vmem:[#allocation2 + $0x68] sm:$0xff] %vm461_vm0, %v817_v17  ;;  %1736 = vmatmul.msk.bf16.vlgmr.msrb.gmra.mxu3 %vm461_vm0, %v1389_v55  ;;  %v1226_v45 = vmul.f32 %v2272_v34, %v1205_v4  ;;  %v1068_v54 = vmul.f32 %v2172_v10, %v1205_v4  ;;  %v1037_v61 = vadd.f32 %v1021_v11, %v984_v22 }
 0x103   : > { %2851 = vst [vmem:[#allocation22_spill] sm:$0xff] %v2516_v49  ;;  %v1075_v60 = vmul.f32 %v2172_v10, %v2516_v49  ;;  %v1196_v25 = vadd.f32 %v1180_v44, %v1143_v31  ;;  %v1287_v5 = vmul.f32 %v2288_v46, %v2189_v21  ;;  %v916_v18 = vmul.f32 %v2150_v63, %v2469_v23 }
 0x104   : > { %v969_v6 = vmul.f32 %v2141_v62, %v2493_v24  ;;  %v1188_v41 = vadd.f32 %v1172_v16, %v1135_v28  ;;  %v1189_v48 = vadd.f32 %v1173_v7, %v1136_v3  ;;  %v1030_v53 = vadd.f32 %v1014_v36, %v977_v27 }
 0x105   : > { %v2532_v17 = vmul.f32 %v2172_v10, %v2321_v12  ;;  %v1031_v22 = vadd.f32 %v1015_v58, %v978_v39  ;;  %v910_v11 = vmul.f32 %v2150_v63, %v1205_v4  ;;  %v1250_v56 = vadd.f32 %v1234_v50, %v1196_v25 }
 0x106   : > { %v1340_v44 = vmul.f32 %v2365_v8, %v2214_v40  ;;  %v1242_v33 = vadd.f32 %v1226_v45, %v1188_v41  ;;  %v1084_v31 = vadd.f32 %v1068_v54, %v1030_v53  ;;  %v1091_v23 = vadd.f32 %v1075_v60, %v1037_v61 }
 0x107   : > { %v917_v16 = vmul.f32 %v2150_v63, %v2516_v49  ;;  %v1303_v27 = vadd.f32 %v1287_v5, %v1250_v56  ;;  %v985_v36 = vadd.f32 %v969_v6, %v916_v18  ;;  %v1022_v4 = vmul.f32 %v2167_v9, %v2495_v47 }
 0x108   : > { %v2535_v55 = vld [vmem:[#allocation2 + $0xc9] sm:$0xff]  ;;  %v1076_v39 = vmul.f32 %v2172_v10, %v2185_v19 }
 0x109   : > { %v1206_v28 = vld [vmem:[#allocation2 + $0x68] sm:$0xff]  ;;  %v1128_v60 = vmul.f32 %v2208_v37, %v2535_v55 }
 0x10a   : > { %v1258_v3 = vld [vmem:[#allocation2 + $0x61] sm:$0xff]  ;;  %v1259_v7 = vld [vmem:[#allocation2 + $0x69] sm:$0xff]  ;;  %v1227_v58 = vmul.f32 %v2272_v34, %v1206_v28  ;;  %v1069_v61 = vmul.f32 %v2172_v10, %v1206_v28  ;;  %v911_v2 = vmul.f32 %v2150_v63, %v1206_v28 }
 0x10b   : > { %v1279_v50 = vmul.f32 %v2288_v46, %v1258_v3  ;;  %v1311_v45 = vld [vmem:[#allocation2 + $0x62] sm:$0xff]  ;;  %v1312_v54 = vld [vmem:[#allocation2 + $0x6a] sm:$0xff]  ;;  %v1280_v25 = vmul.f32 %v2288_v46, %v1259_v7  ;;  %v1121_v6 = vmul.f32 %v2208_v37, %v1258_v3  ;;  %v1122_v56 = vmul.f32 %v2208_v37, %v1259_v7 }
 0x10c   : > { %v1332_v5 = vmul.f32 %v2365_v8, %v1311_v45  ;;  %v1333_v18 = vmul.f32 %v2365_v8, %v1312_v54  ;;  %v1243_v19 = vadd.f32 %v1227_v58, %v1189_v48  ;;  %v1085_v53 = vadd.f32 %v1069_v61, %v1031_v22  ;;  %v2555_v47 = vld [vmem:[#allocation2 + $0xca] sm:$0xff] }
 0x10d   : > { %v1295_v41 = vadd.f32 %v1279_v50, %v1242_v33  ;;  %v1137_v24 = vadd.f32 %v1121_v6, %v1084_v31  ;;  %v1175_v49 = vmul.f32 %v2251_v14, %v1312_v54  ;;  %v963_v38 = vmul.f32 %v2141_v62, %v1258_v3 }
 0x10e   : > { %v1296_v59 = vadd.f32 %v1280_v25, %v1243_v19  ;;  %v1138_v15 = vadd.f32 %v1122_v56, %v1085_v53  ;;  %v964_v1 = vmul.f32 %v2141_v62, %v1259_v7  ;;  %v1174_v48 = vmul.f32 %v2251_v14, %v1311_v45 }
 0x10f   : > { %v1348_v12 = vadd.f32 %v1332_v5, %v1295_v41  ;;  %v979_v33 = vadd.f32 %v963_v38, %v910_v11  ;;  %v1181_v22 = vmul.f32 %v2251_v14, %v2555_v47  ;;  %v970_v31 = vmul.f32 %v2141_v62, %v2535_v55 }
 0x110   : > { %v1349_v58 = vadd.f32 %v1333_v18, %v1296_v59  ;;  %v1191_v50 = vadd.f32 %v1175_v49, %v1138_v15  ;;  %v980_v61 = vadd.f32 %v964_v1, %v911_v2  ;;  %v1016_v28 = vmul.f32 %v2167_v9, %v1311_v45 }
 0x111   : > { %v1190_v3 = vadd.f32 %v1174_v48, %v1137_v24  ;;  %v1017_v25 = vmul.f32 %v2167_v9, %v1312_v54  ;;  %v1144_v5 = vadd.f32 %v1128_v60, %v1091_v23  ;;  %v1038_v6 = vadd.f32 %v1022_v4, %v985_v36 }
 0x112   : > { %v1368_v7 = vadd.f32 %v2415_v35, %v1348_v12  ;;  %v1369_v38 = vadd.f32 %v2415_v35, %v1349_v58  ;;  %v1032_v11 = vadd.f32 %v1016_v28, %v979_v33  ;;  %v1356_v19 = vadd.f32 %v1340_v44, %v1303_v27 }
 0x113   : > { %v1245_v41 = vadd.f32 %v2342_v29, %v1191_v50  ;;  %v1033_v53 = vadd.f32 %v1017_v25, %v980_v61  ;;  %v1197_v56 = vadd.f32 %v1181_v22, %v1144_v5  ;;  %v1235_v1 = vmul.f32 %v2272_v34, %v2187_v20  ;;  %v2852_v61 = vld [vmem:[#allocation3_spill] sm:$0xff]  ;;  %v2855_v5 = vld [vmem:[#allocation10_spill] sm:$0xff] }
 0x114   : > { %v1383_v15 = vpack.c.bf16 %v1369_v38, %v1368_v7  ;;  %v2574_v59 = vadd.f32 %v2415_v35, %v1356_v19  ;;  %v1023_v23 = vmul.f32 %v2167_v9, %v2555_v47  ;;  %v1129_v12 = vmul.f32 %v2208_v37, %v2189_v21  ;;  %v2856_v7 = vld [vmem:[#allocation11_spill] sm:$0xff] }
 0x115   : > { %v1123_v2 = vmul.f32 %v2208_v37, %v2344_v30  ;;  %v1124_v29 = vmul.f32 %v2208_v37, %v2379_v0  ;;  %v1251_v24 = vadd.f32 %v1235_v1, %v1197_v56  ;;  %v1288_v49 = vmul.f32 %v2288_v46, %v2202_v32 }
 0x116   : > { %1730 = vmatmul.msk.bf16.gmra.mxu1 %vm461_vm0, %v1383_v15  ;;  %v1244_v44 = vadd.f32 %v2325_v13, %v1190_v3  ;;  %v1086_v27 = vadd.f32 %v2435_v43, %v1032_v11  ;;  %v986_v36 = vadd.f32 %v970_v31, %v917_v16  ;;  %v1092_v4 = vadd.f32 %v1076_v39, %v1038_v6  ;;  %v2853_v3 = vld [vmem:[#allocation4_spill] sm:$0xff] }
 0x117   : > { %v1298_v21 = vadd.f32 %v2386_v57, %v1245_v41  ;;  %v1087_v45 = vadd.f32 %v2532_v17, %v1033_v53  ;;  %v1304_v54 = vadd.f32 %v1288_v49, %v1251_v24  ;;  %v1341_v60 = vmul.f32 %v2365_v8, %v2227_v51  ;;  %v2857_v11 = vld [vmem:[#allocation12_spill] sm:$0xff]  ;;  %v2858_v53 = vld [vmem:[#allocation6_spill] sm:$0xff] }
 0x118   : > { %v1039_v18 = vadd.f32 %v1023_v23, %v986_v36  ;;  %v1077_v48 = vmul.f32 %v2172_v10, %v2187_v20  ;;  %v1145_v33 = vadd.f32 %v1129_v12, %v1092_v4  ;;  %v1182_v13 = vmul.f32 %v2251_v14, %v2214_v40  ;;  %v2859_v12 = vld [vmem:[#allocation8_spill] sm:$0xff]  ;;  %v2861_v4 = vld [vmem:[#allocation13_spill] sm:$0xff] }
 0x119   : > { %v1357_v22 = vadd.f32 %v1341_v60, %v1304_v54  ;;  %v1130_v43 = vmul.f32 %v2208_v37, %v2202_v32  ;;  %v1183_v57 = vmul.f32 %v2251_v14, %v2227_v51  ;;  %v1236_v17 = vmul.f32 %v2272_v34, %v2229_v52  ;;  %v2854_v52 = vld [vmem:[#allocation5_spill] sm:$0xff] }
 0x11a   : > { %v1297_v16 = vadd.f32 %v2357_v42, %v1244_v44  ;;  %v1139_v39 = vadd.f32 %v1123_v2, %v1086_v27  ;;  %v1093_v31 = vadd.f32 %v1077_v48, %v1039_v18  ;;  %v1198_v58 = vadd.f32 %v1182_v13, %v1145_v33  ;;  %v2860_v44 = vld [vmem:[#allocation9_spill] sm:$0xff]  ;;  %v2863_v48 = vld [vmem:[#allocation16_spill] sm:$0xff] }
 0x11b   : > { %v1351_v20 = vadd.f32 %v2400_v26, %v1298_v21  ;;  %v1140_v50 = vadd.f32 %v1124_v29, %v1087_v45  ;;  %v2606_v40 = vadd.f32 %v2415_v35, %v1357_v22  ;;  %v1289_v32 = vmul.f32 %v2288_v46, %v2852_v61  ;;  %v2862_v45 = vld [vmem:[#allocation7_spill] sm:$0xff] }
 0x11c   : > { %v1146_v28 = vadd.f32 %v1130_v43, %v1093_v31  ;;  %v1237_v51 = vmul.f32 %v2272_v34, %v2853_v3  ;;  %v1252_v25 = vadd.f32 %v1236_v17, %v1198_v58  ;;  %v1342_v42 = vmul.f32 %v2365_v8, %v2854_v52  ;;  %v2865_v31 = vld [vmem:[#allocation17_spill] sm:$0xff] }
 0x11d   : > { %v1176_v6 = vmul.f32 %v2251_v14, %v2855_v5  ;;  %v1177_v26 = vmul.f32 %v2251_v14, %v2856_v7  ;;  %v1387_v38 = vpack.c.bf16 %v2606_v40, %v2574_v59  ;;  %v1350_v19 = vadd.f32 %v2857_v11, %v1297_v16 }
 0x11e   : > { %v1199_v41 = vadd.f32 %v1183_v57, %v1146_v28  ;;  %v1290_v56 = vmul.f32 %v2288_v46, %v2858_v53  ;;  %v1305_v1 = vadd.f32 %v1289_v32, %v1252_v25  ;;  %v1371_v15 = vadd.f32 %v2415_v35, %v1351_v20  ;;  %v2866_v25 = vld [vmem:[#allocation15_spill] sm:$0xff] }
 0x11f   : > { %v1192_v23 = vadd.f32 %v1176_v6, %v1139_v39  ;;  %v913_v2 = vmul.f32 %v2150_v63, %v2859_v12  ;;  %v966_v29 = vmul.f32 %v2141_v62, %v2379_v0  ;;  %v1193_v24 = vadd.f32 %v1177_v26, %v1140_v50 }
 0x120   : > { %v1253_v49 = vadd.f32 %v1237_v51, %v1199_v41  ;;  %v1343_v27 = vmul.f32 %v2365_v8, %v2860_v44  ;;  %v1358_v36 = vadd.f32 %v1342_v42, %v1305_v1  ;;  %v1230_v21 = vmul.f32 %v2272_v34, %v2861_v4  ;;  %v2867_v42 = vld [vmem:[#allocation19_spill] sm:$0xff]  ;;  %v2869_v44 = vld [vmem:[#allocation18_spill] sm:$0xff] }
 0x121   : > { %v912_v54 = vmul.f32 %v2150_v63, %v2862_v45  ;;  %v965_v60 = vmul.f32 %v2141_v62, %v2344_v30  ;;  %v1370_v18 = vadd.f32 %v2415_v35, %v1350_v19  ;;  %v1231_v0 = vmul.f32 %v2272_v34, %v2863_v48  ;;  %v2864_v62 = vld [vmem:[#allocation14_spill] sm:$0xff] }
 0x122   : > { %v1306_v33 = vadd.f32 %v1290_v56, %v1253_v49  ;;  %v1378_v13 = vadd.f32 %v2415_v35, %v1358_v36  ;;  %v982_v22 = vadd.f32 %v966_v29, %v913_v2  ;;  %v1019_v43 = vmul.f32 %v2167_v9, %v2856_v7  ;;  %v2868_v2 = vld [vmem:[#allocation22_spill] sm:$0xff] }
 0x123   : > { %v1384_v57 = vpack.c.bf16 %v1371_v15, %v1370_v18  ;;  %v1246_v17 = vadd.f32 %v1230_v21, %v1192_v23  ;;  %v1247_v16 = vadd.f32 %v1231_v0, %v1193_v24  ;;  %v981_v63 = vadd.f32 %v965_v60, %v912_v54  ;;  %v2870_v21 = vld [vmem:[#allocation20_spill] sm:$0xff] }
 0x124   : > { %v1359_v39 = vadd.f32 %v1343_v27, %v1306_v33  ;;  %v1283_v30 = vmul.f32 %v2288_v46, %v2864_v62  ;;  %v1284_v58 = vmul.f32 %v2288_v46, %v2865_v31  ;;  %v1018_v20 = vmul.f32 %v2167_v9, %v2855_v5 }
 0x125   : > { %v1035_v61 = vadd.f32 %v1019_v43, %v982_v22  ;;  %v1073_v3 = vmul.f32 %v2172_v10, %v2863_v48  ;;  %v1336_v52 = vmul.f32 %v2365_v8, %v2866_v25  ;;  %v1337_v6 = vmul.f32 %v2365_v8, %v2867_v42 }
 0x126   : > { %1731 = vmatmul.msk.bf16.gmra.mxu1 %vm461_vm0, %v1384_v57  ;;  %v1379_v50 = vadd.f32 %v2415_v35, %v1359_v39  ;;  %v1299_v32 = vadd.f32 %v1283_v30, %v1246_v17  ;;  %v1300_v28 = vadd.f32 %v1284_v58, %v1247_v16  ;;  %v1034_v7 = vadd.f32 %v1018_v20, %v981_v63 }
 0x127   : > { %v1072_v26 = vmul.f32 %v2172_v10, %v2861_v4  ;;  %v1089_v11 = vadd.f32 %v1073_v3, %v1035_v61  ;;  %v1126_v19 = vmul.f32 %v2208_v37, %v2865_v31  ;;  %v1125_v53 = vmul.f32 %v2208_v37, %v2864_v62 }
 0x128   : > { %v1388_v51 = vpack.c.bf16 %v1379_v50, %v1378_v13  ;;  %v1352_v9 = vadd.f32 %v1336_v52, %v1299_v32  ;;  %v1353_v5 = vadd.f32 %v1337_v6, %v1300_v28  ;;  %v1179_v23 = vmul.f32 %v2251_v14, %v2867_v42 }
 0x129   : > { %v1088_v41 = vadd.f32 %v1072_v26, %v1034_v7  ;;  %v1142_v15 = vadd.f32 %v1126_v19, %v1089_v11  ;;  %v1178_v10 = vmul.f32 %v2251_v14, %v2866_v25  ;;  %v1233_v29 = vmul.f32 %v2272_v34, %v2868_v2 }
 0x12a   : > { %v1372_v56 = vadd.f32 %v2415_v35, %v1352_v9  ;;  %v1373_v1 = vadd.f32 %v2415_v35, %v1353_v5  ;;  %v1232_v37 = vmul.f32 %v2272_v34, %v2869_v44  ;;  %v1286_v27 = vmul.f32 %v2288_v46, %v2535_v55  ;;  %v2871_v34 = vld [vmem:[#allocation21_spill] sm:$0xff] }
 0x12b   : > { %v1141_v12 = vadd.f32 %v1125_v53, %v1088_v41  ;;  %v1195_v49 = vadd.f32 %v1179_v23, %v1142_v15  ;;  %v1285_v14 = vmul.f32 %v2288_v46, %v2870_v21  ;;  %v1339_v60 = vmul.f32 %v2365_v8, %v2555_v47  ;;  %v2695_v46 = vld [vmem:[%s2771_s6] ss:$0 sm:$0xff] }
 0x12c   : > { %v1385_v24 = vpack.c.bf16 %v1373_v1, %v1372_v56  ;;  %v1338_v48 = vmul.f32 %v2365_v8, %v2871_v34 }
 0x12d   : > { %v1194_v36 = vadd.f32 %v1178_v10, %v1141_v12  ;;  %v1249_v4 = vadd.f32 %v1233_v29, %v1195_v49 }
 0x12f   : > { %v1248_v45 = vadd.f32 %v1232_v37, %v1194_v36  ;;  %v1302_v54 = vadd.f32 %v1286_v27, %v1249_v4 }
 0x131   : > { %v1301_v18 = vadd.f32 %v1285_v14, %v1248_v45  ;;  %v1355_v55 = vadd.f32 %v1339_v60, %v1302_v54 }
 0x133   : > { %v1354_v0 = vadd.f32 %v1338_v48, %v1301_v18  ;;  %v1375_v33 = vadd.f32 %v2415_v35, %v1355_v55 }
 0x135   : > { %v1374_v13 = vadd.f32 %v2415_v35, %v1354_v0 }
 0x136   : > { %1732 = vmatmul.msk.bf16.gmra.mxu1 %vm461_vm0, %v1385_v24 }
 0x137   : > { %v1386_v22 = vpack.c.bf16 %v1375_v33, %v1374_v13 }
 0x146   : > { %1733 = vmatmul.msk.bf16.gmra.mxu1 %vm461_vm0, %v1386_v22 }
 0x156   : > { %1734 = vmatmul.msk.bf16.gmra.mxu1 %vm461_vm0, %v1387_v38 }
 0x166   : > { %1735 = vmatmul.msk.bf16.gmra.mxu1 %vm461_vm0, %v1388_v51  ;;  %vm1491_vm0 = vcmask 64512  }
 0x178   : > { %v1435_v35 = vpop.f32.mrf.mxu1 }
 0x179   : > { %v1436_v8 = vadd.f32 %v2695_v46, %v1435_v35 }
 0x17b   : > { %v1475_v47 = vmax.f32 %v1436_v8, 0.0 }
 0x17d   : > { %1492 = vst.msk [vmem:[%s2701_s17] sm:$0xff] %vm1491_vm0, %v1475_v47 }
 0x180   : > { %v1437_v59 = vpop.f32.mrf.mxu1 }
 0x181   : > { %v1438_v40 = vadd.f32 %v2695_v46, %v1437_v59 }
 0x183   : > { %v1476_v38 = vmax.f32 %v1438_v40, 0.0 }
 0x185   : > { %1493 = vst.msk [vmem:[%s2701_s17 + $0x8] sm:$0xff] %vm1491_vm0, %v1476_v38  ;;  %v1470_v43 = vpop.f32.mrf.mxu3 }
 0x186   : > { %v1471_v57 = vadd.f32 %v2695_v46, %v1470_v43 }
 0x188   : > { %v1489_v17 = vmax.f32 %v1471_v57, 0.0 }
 0x18a   : > { %1506 = vst.msk [vmem:[%s2701_s17 + $0x70] sm:$0xff] %vm1491_vm0, %v1489_v17 }
 0x18d   : > { %v1472_v16 = vpop.f32.mrf.mxu3 }
 0x18e   : > { %v1473_v39 = vadd.f32 %v2695_v46, %v1472_v16 }
 0x190   : > { %v1490_v63 = vmax.f32 %v1473_v39, 0.0 }
 0x192   : > { %1507 = vst.msk [vmem:[%s2701_s17 + $0x78] sm:$0xff] %vm1491_vm0, %v1490_v63 }
 0x193   : > { %v1440_v62 = vpop.f32.mrf.mxu1 }
 0x194   : > { %v1441_v30 = vadd.f32 %v2695_v46, %v1440_v62 }
 0x196   : > { %v1477_v31 = vmax.f32 %v1441_v30, 0.0 }
 0x198   : > { %1494 = vst.msk [vmem:[%s2701_s17 + $0x10] sm:$0xff] %vm1491_vm0, %v1477_v31 }
 0x19b   : > { %v1442_v58 = vpop.f32.mrf.mxu1 }
 0x19c   : > { %v1443_v20 = vadd.f32 %v2695_v46, %v1442_v58 }
 0x19e   : > { %v1478_v50 = vmax.f32 %v1443_v20, 0.0 }
 0x1a0   : > { %1495 = vst.msk [vmem:[%s2701_s17 + $0x18] sm:$0xff] %vm1491_vm0, %v1478_v50 }
 0x1a3   : > { %v1445_v61 = vpop.f32.mrf.mxu1 }
 0x1a4   : > { %v1446_v32 = vadd.f32 %v2695_v46, %v1445_v61 }
 0x1a6   : > { %v1479_v28 = vmax.f32 %v1446_v32, 0.0 }
 0x1a8   : > { %1496 = vst.msk [vmem:[%s2701_s17 + $0x20] sm:$0xff] %vm1491_vm0, %v1479_v28 }
 0x1ab   : > { %v1447_v3 = vpop.f32.mrf.mxu1 }
 0x1ac   : > { %v1448_v51 = vadd.f32 %v2695_v46, %v1447_v3 }
 0x1ae   : > { %v1480_v25 = vmax.f32 %v1448_v51, 0.0 }
 0x1b0   : > { %1497 = vst.msk [vmem:[%s2701_s17 + $0x28] sm:$0xff] %vm1491_vm0, %v1480_v25 }
 0x1b3   : > { %v1450_v52 = vpop.f32.mrf.mxu1 }
 0x1b4   : > { %v1451_v42 = vadd.f32 %v2695_v46, %v1450_v52 }
 0x1b6   : > { %v1481_v6 = vmax.f32 %v1451_v42, 0.0 }
 0x1b8   : > { %1498 = vst.msk [vmem:[%s2701_s17 + $0x30] sm:$0xff] %vm1491_vm0, %v1481_v6 }
 0x1bb   : > { %v1452_v7 = vpop.f32.mrf.mxu1 }
 0x1bc   : > { %v1453_v26 = vadd.f32 %v2695_v46, %v1452_v7 }
 0x1be   : > { %v1482_v9 = vmax.f32 %v1453_v26, 0.0 }
 0x1c0   : > { %1499 = vst.msk [vmem:[%s2701_s17 + $0x38] sm:$0xff] %vm1491_vm0, %v1482_v9 }
 0x1c3   : > { %v1455_v5 = vpop.f32.mrf.mxu1 }
 0x1c4   : > { %v1456_v11 = vadd.f32 %v2695_v46, %v1455_v5 }
 0x1c6   : > { %v1483_v19 = vmax.f32 %v1456_v11, 0.0 }
 0x1c8   : > { %1500 = vst.msk [vmem:[%s2701_s17 + $0x40] sm:$0xff] %vm1491_vm0, %v1483_v19 }
 0x1cb   : > { %v1457_v41 = vpop.f32.mrf.mxu1 }
 0x1cc   : > { %v1458_v53 = vadd.f32 %v2695_v46, %v1457_v41 }
 0x1ce   : > { %v1484_v56 = vmax.f32 %v1458_v53, 0.0 }
 0x1d0   : > { %1501 = vst.msk [vmem:[%s2701_s17 + $0x48] sm:$0xff] %vm1491_vm0, %v1484_v56 }
 0x1d3   : > { %v1460_v1 = vpop.f32.mrf.mxu1 }
 0x1d4   : > { %v1461_v15 = vadd.f32 %v2695_v46, %v1460_v1 }
 0x1d6   : > { %v1485_v23 = vmax.f32 %v1461_v15, 0.0 }
 0x1d8   : > { %1502 = vst.msk [vmem:[%s2701_s17 + $0x50] sm:$0xff] %vm1491_vm0, %v1485_v23 }
 0x1db   : > { %v1462_v12 = vpop.f32.mrf.mxu1 }
 0x1dc   : > { %v1463_v10 = vadd.f32 %v2695_v46, %v1462_v12 }
 0x1de   : > { %v1486_v2 = vmax.f32 %v1463_v10, 0.0 }
 0x1e0   : > { %1503 = vst.msk [vmem:[%s2701_s17 + $0x58] sm:$0xff] %vm1491_vm0, %v1486_v2 }
 0x1e3   : > { %v1465_v29 = vpop.f32.mrf.mxu1 }
 0x1e4   : > { %v1466_v24 = vadd.f32 %v2695_v46, %v1465_v29 }
 0x1e6   : > { %v1487_v49 = vmax.f32 %v1466_v24, 0.0 }
 0x1e8   : > { %1504 = vst.msk [vmem:[%s2701_s17 + $0x60] sm:$0xff] %vm1491_vm0, %v1487_v49 }
 0x1eb   : > { %v1467_v44 = vpop.f32.mrf.mxu1 }
 0x1ec   : > { %v1468_v37 = vadd.f32 %v2695_v46, %v1467_v44 }
 0x1ee   : > { %v1488_v27 = vmax.f32 %v1468_v37, 0.0 }
 0x1f0   : > { %1505 = vst.msk [vmem:[%s2701_s17 + $0x68] sm:$0xff] %vm1491_vm0, %v1488_v27 }
 0x1f1 PF: > { %s17_s28 = sadd.s32 1, %s1858_s28   ;;  %s2872_s24 = smov %s1850_s26 }
 0x1f2   : > { %p14_p7 = scmp.ge.s32.totalorder %s17_s28, 6   ;;  %s2873_s25 = smov %s1854_s27 }
 0x1f3   : > { %s2874_s26 = smov %s2877_s29  ;;  %s2875_s27 = smov %s2881_s30 }
 0x1f4   :  { %16 = sbr.rel (!%p14_p7) target bundleno = 3 (0x3), region = 89 }

</bundles_post_ra>
